<compile_context>
chip_gen: v5e
topology: v5e:2x2
jax: 0.10.0
libtpu: 0.0.40
codegen_flags: <defaults>
</compile_context>

<pallas_src>
import functools

import jax
import jax.numpy as jnp
from jax.experimental import pallas as pl
from jax.experimental.pallas import tpu as pltpu


def _round8(n):
    return -(-n // 8) * 8


def _slab_layout(F, SB, H):
    """Row offsets of the packed (rows, 4H) weight slab (8-aligned rows)."""
    offs = {}
    r = 0
    offs["wih0"] = r;    r += _round8(F)
    offs["bias_g0"] = r; r += _round8(SB)
    offs["wih1"] = r;    r += _round8(H)
    offs["b1"] = r;      r += 8
    offs["fcw"] = r;     r += _round8(H)
    offs["fcb"] = r;     r += 8
    return offs, r


def pack_params(p, batch):
    """One-time parameter packing (layout + algebraically exact rescaling only)."""
    B = batch
    cw, cb = p["cw"], p["cb"]
    S = cw.shape[0]
    F = p["wih0_t"].shape[0]
    H = p["whh0_t"].shape[0]
    H4 = 4 * H

    def scale_g(w):  # pre-scale the cell-input ('g') gate columns by 2
        return w.at[..., 2 * H:3 * H].multiply(2.0)   # -> tanh(x)=2*sigmoid(2x)-1

    wih0 = scale_g(p["wih0_t"])   # (F, 4H)
    whh0 = scale_g(p["whh0_t"])   # (H, 4H)
    b0 = scale_g(p["b0"])         # (1, 4H)
    wih1 = scale_g(p["wih1_t"])   # (H, 4H)
    whh1 = scale_g(p["whh1_t"])   # (H, 4H)
    b1 = scale_g(p["b1"])         # (1, 4H)

    # Conv1d(k=1) acting on the time-major flattened (S*B, F) layout.
    # TODO(synk): for large B, replace kron(cw, I_B) with a (S,S) @ (S, B*F)
    # view so the conv weight stays O(S^2) instead of O((S*B)^2).
    cwk = jnp.kron(cw, jnp.eye(B, dtype=jnp.float32))          # (S*B, S*B)
    cbk = jnp.repeat(cb, B, axis=0)                            # (S*B, 1)
    # Reassociated prologue bias: g0 = cwk @ (x @ wih0) + bias_g0
    colsum = jnp.sum(wih0, axis=0, keepdims=True)              # (1, 4H)
    bias_g0 = cbk @ colsum + b0                                # (S*B, 4H)

    # Block-diagonal recurrent weight for the fused wavefront step.
    whh_blk = jnp.zeros((2 * H, 2 * H4), jnp.float32)
    whh_blk = whh_blk.at[0:H, 0:H4].set(whh0)
    whh_blk = whh_blk.at[H:2 * H, H4:2 * H4].set(whh1)

    offs, rows = _slab_layout(F, S * B, H)
    O = p["fcb"].shape[1]
    slab = jnp.zeros((rows, H4), jnp.float32)
    slab = slab.at[offs["wih0"]:offs["wih0"] + F, :].set(wih0)
    slab = slab.at[offs["bias_g0"]:offs["bias_g0"] + S * B, :].set(bias_g0)
    slab = slab.at[offs["wih1"]:offs["wih1"] + H, :].set(wih1)
    slab = slab.at[offs["b1"], :].set(b1[0])
    slab = slab.at[offs["fcw"]:offs["fcw"] + H, 0:O].set(p["fcw_t"])
    slab = slab.at[offs["fcb"], 0:O].set(p["fcb"][0])

    return {"cwk": cwk, "slab": slab, "whh_blk": whh_blk}


@functools.partial(jax.jit, static_argnames=("out_size",))
def cnn_lstm_forward(x, packed, *, out_size):
    B, S, F = x.shape
    H = packed["whh_blk"].shape[0] // 2
    H4 = 4 * H
    O = out_size
    offs, _ = _slab_layout(F, S * B, H)

    # Layout plumbing only: time-major flattened view (row s*B+b = x[b, s, :]).
    x_sb = jnp.transpose(x, (1, 0, 2)).reshape(S * B, F)

    def half_cell(s_gates, c):
        """LSTM cell update given sigmoid(pre-scaled gates) for ONE layer."""
        i = s_gates[:, 0:H]
        f = s_gates[:, H:2 * H]
        g = 2.0 * s_gates[:, 2 * H:3 * H] - 1.0   # == tanh of original g preact
        o = s_gates[:, 3 * H:4 * H]
        c_new = f * c + i * g
        h_new = o * jnp.tanh(c_new)
        return h_new, c_new

    def kernel(x_ref, cwk_ref, slab_ref, whh_ref, out_ref):
        wih0 = slab_ref[offs["wih0"]:offs["wih0"] + F, :]            # (F, 4H)
        bias_g0 = slab_ref[offs["bias_g0"]:offs["bias_g0"] + S * B, :]
        wih1 = slab_ref[offs["wih1"]:offs["wih1"] + H, :]            # (H, 4H)
        b1 = slab_ref[offs["b1"]:offs["b1"] + 1, :]                  # (1, 4H)
        whh_blk = whh_ref[...]                                       # (2H, 8H)

        # ---- Prologue (off the recurrent critical path), lane-dense N=4H ----
        proj = jnp.dot(x_ref[...], wih0, preferred_element_type=jnp.float32)
        g0 = jnp.dot(cwk_ref[...], proj,
                     preferred_element_type=jnp.float32) + bias_g0   # (S*B, 4H)

        # ---- Wavefront recurrence: layer-0 t=w and layer-1 t=w-1 per step ----
        # step 0: layer-0 t=0 (h0 == 0, so no recurrent matmul needed)
        h0, c0 = half_cell(jax.nn.sigmoid(g0[0:B, :]),
                           jnp.zeros((B, H), jnp.float32))
        gin1 = jnp.dot(h0, wih1, preferred_element_type=jnp.float32) + b1

        h1 = jnp.zeros((B, H), jnp.float32)
        c1 = jnp.zeros((B, H), jnp.float32)
        for w in range(1, S):                 # fully unrolled wavefront steps
            hcat = jnp.concatenate([h0, h1], axis=1)                 # (B, 2H)
            gates = (jnp.concatenate([g0[w * B:(w + 1) * B, :], gin1], axis=1)
                     + jnp.dot(hcat, whh_blk,
                               preferred_element_type=jnp.float32))  # (B, 8H)
            s = jax.nn.sigmoid(gates)         # one EUP pass for both layers
            h0, c0 = half_cell(s[:, 0:H4], c0)          # layer-0 cell, t = w
            h1, c1 = half_cell(s[:, H4:2 * H4], c1)     # layer-1 cell, t = w-1
            # layer-1 input projection for t = w (hides under next dep. matmul)
            gin1 = jnp.dot(h0, wih1, preferred_element_type=jnp.float32) + b1

        # final step: layer-1 t = S-1 (layer 0 is done)
        whh1 = whh_ref[H:2 * H, H4:2 * H4]                           # (H, 4H)
        gates1 = gin1 + jnp.dot(h1, whh1, preferred_element_type=jnp.float32)
        h1, c1 = half_cell(jax.nn.sigmoid(gates1), c1)

        # ---- fc on the last timestep's layer-1 hidden state ----
        fcw = slab_ref[offs["fcw"]:offs["fcw"] + H, :]   # (H, 4H), cols >= O zero
        fcb = slab_ref[offs["fcb"]:offs["fcb"] + 1, :]
        y = jnp.dot(h1, fcw, preferred_element_type=jnp.float32) + fcb
        out_ref[...] = y[:, 0:O]

    vmem = pl.BlockSpec(memory_space=pltpu.MemorySpace.VMEM)
    # TODO(synk): once batch grows to several-microseconds of per-core work,
    # add a ("parallel",) grid over B-tiles (replicate the weight slabs) so
    # v7x's two TensorCores split the batch.
    return pl.pallas_call(
        kernel,
        out_shape=jax.ShapeDtypeStruct((B, O), jnp.float32),
        in_specs=[vmem] * 4,
        out_specs=vmem,
    )(x_sb, packed["cwk"], packed["slab"], packed["whh_blk"])


def init_params(key, conv_input, input_size, hidden_size, output_size):
    """Deterministic PyTorch-style uniform init; shapes match nn.Module.__init__."""
    C, F, H, O = conv_input, input_size, hidden_size, output_size
    ks = jax.random.split(key, 12)

    def unif(k, shape, fan):
        bound = 1.0 / (fan ** 0.5)
        return jax.random.uniform(k, shape, jnp.float32, -bound, bound)

    cw = unif(ks[0], (C, C), C)                  # Conv1d weight (C, C, 1) squeezed
    cb = unif(ks[1], (C, 1), C)                  # Conv1d bias
    wih0 = unif(ks[2], (4 * H, F), H)            # LSTM layer 0
    whh0 = unif(ks[3], (4 * H, H), H)
    b0 = unif(ks[4], (1, 4 * H), H) + unif(ks[5], (1, 4 * H), H)   # b_ih + b_hh
    wih1 = unif(ks[6], (4 * H, H), H)            # LSTM layer 1
    whh1 = unif(ks[7], (4 * H, H), H)
    b1 = unif(ks[8], (1, 4 * H), H) + unif(ks[9], (1, 4 * H), H)
    fcw = unif(ks[10], (O, H), H)                # Linear
    fcb = unif(ks[11], (1, O), H)
    return {
        "cw": cw, "cb": cb,
        "wih0_t": wih0.T, "whh0_t": whh0.T, "b0": b0,
        "wih1_t": wih1.T, "whh1_t": whh1.T, "b1": b1,
        "fcw_t": fcw.T, "fcb": fcb,
    }


def reference_forward(x, p):
    """Pure-JAX reference reproducing the PyTorch forward for verification."""
    B, S, F = x.shape
    H = p["whh0_t"].shape[0]
    y = jnp.einsum("os,bsf->bof", p["cw"], x) + p["cb"].reshape(1, S, 1)

    def run_layer(seq, wih_t, whh_t, bias):
        h = jnp.zeros((B, H), jnp.float32)
        c = jnp.zeros((B, H), jnp.float32)
        outs = []
        for t in range(S):
            g = seq[:, t, :] @ wih_t + h @ whh_t + bias
            i = jax.nn.sigmoid(g[:, :H])
            f = jax.nn.sigmoid(g[:, H:2 * H])
            gg = jnp.tanh(g[:, 2 * H:3 * H])
            o = jax.nn.sigmoid(g[:, 3 * H:])
            c = f * c + i * gg
            h = o * jnp.tanh(c)
            outs.append(h)
        return jnp.stack(outs, axis=1), h

    seq0, _ = run_layer(y, p["wih0_t"], p["whh0_t"], p["b0"])
    _, h_last = run_layer(seq0, p["wih1_t"], p["whh1_t"], p["b1"])
    return h_last @ p["fcw_t"] + p["fcb"]


if __name__ == "__main__":
    # CNN_LSTM(conv_input=8, input_size=16, hidden_size=32, num_layers=2, output_size=4)
    B, C, L = 2, 8, 16          # batch, conv_input (= seq len), input_size
    H, O = 32, 4                # hidden_size, output_size

    key = jax.random.PRNGKey(0)
    kx, kp = jax.random.split(key)
    x = jax.random.normal(kx, (B, C, L), jnp.float32)
    params = init_params(kp, C, L, H, O)
    packed = pack_params(params, B)      # one-time parameter packing

    out = cnn_lstm_forward(x, packed, out_size=O)
    out = jax.block_until_ready(out)

    ref = reference_forward(x, params)
    assert out.shape == (B, O)
    assert jnp.allclose(out, ref, atol=1e-4, rtol=1e-4), (out, ref)
    print("KERNEL_OK")
</pallas_src>

<mosaic_0001>
module attributes {stable_mosaic.version = 11 : i64} {
  func.func @kernel(%arg0: memref<16x16xf32, #tpu.memory_space<vmem>>, %arg1: memref<16x16xf32, #tpu.memory_space<vmem>>, %arg2: memref<112x128xf32, #tpu.memory_space<vmem>>, %arg3: memref<64x256xf32, #tpu.memory_space<vmem>>, %arg4: memref<2x4xf32, #tpu.memory_space<vmem>>) attributes {dimension_semantics = [], scalar_prefetch = 0 : i64, scratch_operands = 0 : i64, tpu.core_type = #tpu.core_type<tc>} {
    %c0 = arith.constant 0 : index
    %c0_0 = arith.constant 0 : index
    %0 = vector.load %arg2[%c0, %c0_0] : memref<112x128xf32, #tpu.memory_space<vmem>>, vector<16x128xf32>
    %c16 = arith.constant 16 : index
    %c0_1 = arith.constant 0 : index
    %1 = vector.load %arg2[%c16, %c0_1] : memref<112x128xf32, #tpu.memory_space<vmem>>, vector<16x128xf32>
    %c32 = arith.constant 32 : index
    %c0_2 = arith.constant 0 : index
    %2 = vector.load %arg2[%c32, %c0_2] : memref<112x128xf32, #tpu.memory_space<vmem>>, vector<32x128xf32>
    %c64 = arith.constant 64 : index
    %c0_3 = arith.constant 0 : index
    %3 = vector.load %arg2[%c64, %c0_3] : memref<112x128xf32, #tpu.memory_space<vmem>>, vector<1x128xf32>
    %c0_4 = arith.constant 0 : index
    %c0_5 = arith.constant 0 : index
    %4 = vector.load %arg3[%c0_4, %c0_5] : memref<64x256xf32, #tpu.memory_space<vmem>>, vector<64x256xf32>
    %c0_6 = arith.constant 0 : index
    %c0_7 = arith.constant 0 : index
    %5 = vector.load %arg0[%c0_6, %c0_7] : memref<16x16xf32, #tpu.memory_space<vmem>>, vector<16x16xf32>
    %cst = arith.constant dense<0.000000e+00> : vector<16x128xf32>
    %6 = tpu.matmul %5, %0, %cst {dimension_numbers = #tpu.dot_dimension_numbers<[1], [0], [0], [1], [0, 0, 1, 1], [], []>} : vector<16x16xf32>, vector<16x128xf32>, vector<16x128xf32> -> vector<16x128xf32>
    %c0_8 = arith.constant 0 : index
    %c0_9 = arith.constant 0 : index
    %7 = vector.load %arg1[%c0_8, %c0_9] : memref<16x16xf32, #tpu.memory_space<vmem>>, vector<16x16xf32>
    %cst_10 = arith.constant dense<0.000000e+00> : vector<16x128xf32>
    %8 = tpu.matmul %7, %6, %cst_10 {dimension_numbers = #tpu.dot_dimension_numbers<[1], [0], [0], [1], [0, 0, 1, 1], [], []>} : vector<16x16xf32>, vector<16x128xf32>, vector<16x128xf32> -> vector<16x128xf32>
    %9 = arith.addf %8, %1 : vector<16x128xf32>
    %10 = vector.extract_strided_slice %9 {offsets = [0, 0], sizes = [2, 128], strides = [1, 1]} : vector<16x128xf32> to vector<2x128xf32>
    %11 = arith.negf %10 : vector<2x128xf32>
    %12 = math.exp %11 : vector<2x128xf32>
    %cst_11 = arith.constant 1.000000e+00 : f32
    %13 = vector.broadcast %cst_11 : f32 to vector<2x128xf32>
    %14 = arith.addf %13, %12 : vector<2x128xf32>
    %15 = arith.divf %13, %14 : vector<2x128xf32>
    %cst_12 = arith.constant 0.000000e+00 : f32
    %16 = vector.broadcast %cst_12 : f32 to vector<2x32xf32>
    %17 = vector.extract_strided_slice %15 {offsets = [0, 0], sizes = [2, 32], strides = [1, 1]} : vector<2x128xf32> to vector<2x32xf32>
    %18 = vector.extract_strided_slice %15 {offsets = [0, 32], sizes = [2, 32], strides = [1, 1]} : vector<2x128xf32> to vector<2x32xf32>
    %19 = vector.extract_strided_slice %15 {offsets = [0, 64], sizes = [2, 32], strides = [1, 1]} : vector<2x128xf32> to vector<2x32xf32>
    %cst_13 = arith.constant 2.000000e+00 : f32
    %20 = vector.broadcast %cst_13 : f32 to vector<2x32xf32>
    %21 = arith.mulf %20, %19 : vector<2x32xf32>
    %cst_14 = arith.constant 1.000000e+00 : f32
    %22 = vector.broadcast %cst_14 : f32 to vector<2x32xf32>
    %23 = arith.subf %21, %22 : vector<2x32xf32>
    %24 = vector.extract_strided_slice %15 {offsets = [0, 96], sizes = [2, 32], strides = [1, 1]} : vector<2x128xf32> to vector<2x32xf32>
    %25 = arith.mulf %18, %16 : vector<2x32xf32>
    %26 = arith.mulf %17, %23 : vector<2x32xf32>
    %27 = arith.addf %25, %26 : vector<2x32xf32>
    %28 = math.tanh %27 : vector<2x32xf32>
    %29 = arith.mulf %24, %28 : vector<2x32xf32>
    %cst_15 = arith.constant dense<0.000000e+00> : vector<2x128xf32>
    %30 = tpu.matmul %29, %2, %cst_15 {dimension_numbers = #tpu.dot_dimension_numbers<[1], [0], [0], [1], [0, 0, 1, 1], [], []>} : vector<2x32xf32>, vector<32x128xf32>, vector<2x128xf32> -> vector<2x128xf32>
    %31 = vector.broadcast %3 : vector<1x128xf32> to vector<2x128xf32>
    %32 = arith.addf %30, %31 : vector<2x128xf32>
    %cst_16 = arith.constant 0.000000e+00 : f32
    %33 = vector.broadcast %cst_16 : f32 to vector<2x32xf32>
    %cst_17 = arith.constant 0.000000e+00 : f32
    %34 = vector.broadcast %cst_17 : f32 to vector<2x32xf32>
    %35 = tpu.concatenate %29, %33 in 1 : vector<2x32xf32>, vector<2x32xf32> -> vector<2x64xf32>
    %36 = vector.extract_strided_slice %9 {offsets = [2, 0], sizes = [2, 128], strides = [1, 1]} : vector<16x128xf32> to vector<2x128xf32>
    %37 = tpu.concatenate %36, %32 in 1 : vector<2x128xf32>, vector<2x128xf32> -> vector<2x256xf32>
    %cst_18 = arith.constant dense<0.000000e+00> : vector<2x256xf32>
    %38 = tpu.matmul %35, %4, %cst_18 {dimension_numbers = #tpu.dot_dimension_numbers<[1], [0], [0], [1], [0, 0, 1, 1], [], []>} : vector<2x64xf32>, vector<64x256xf32>, vector<2x256xf32> -> vector<2x256xf32>
    %39 = arith.addf %37, %38 : vector<2x256xf32>
    %40 = arith.negf %39 : vector<2x256xf32>
    %41 = math.exp %40 : vector<2x256xf32>
    %cst_19 = arith.constant 1.000000e+00 : f32
    %42 = vector.broadcast %cst_19 : f32 to vector<2x256xf32>
    %43 = arith.addf %42, %41 : vector<2x256xf32>
    %44 = arith.divf %42, %43 : vector<2x256xf32>
    %45 = vector.extract_strided_slice %44 {offsets = [0, 0], sizes = [2, 128], strides = [1, 1]} : vector<2x256xf32> to vector<2x128xf32>
    %46 = vector.extract_strided_slice %45 {offsets = [0, 0], sizes = [2, 32], strides = [1, 1]} : vector<2x128xf32> to vector<2x32xf32>
    %47 = vector.extract_strided_slice %45 {offsets = [0, 32], sizes = [2, 32], strides = [1, 1]} : vector<2x128xf32> to vector<2x32xf32>
    %48 = vector.extract_strided_slice %45 {offsets = [0, 64], sizes = [2, 32], strides = [1, 1]} : vector<2x128xf32> to vector<2x32xf32>
    %cst_20 = arith.constant 2.000000e+00 : f32
    %49 = vector.broadcast %cst_20 : f32 to vector<2x32xf32>
    %50 = arith.mulf %49, %48 : vector<2x32xf32>
    %cst_21 = arith.constant 1.000000e+00 : f32
    %51 = vector.broadcast %cst_21 : f32 to vector<2x32xf32>
    %52 = arith.subf %50, %51 : vector<2x32xf32>
    %53 = vector.extract_strided_slice %45 {offsets = [0, 96], sizes = [2, 32], strides = [1, 1]} : vector<2x128xf32> to vector<2x32xf32>
    %54 = arith.mulf %47, %27 : vector<2x32xf32>
    %55 = arith.mulf %46, %52 : vector<2x32xf32>
    %56 = arith.addf %54, %55 : vector<2x32xf32>
    %57 = math.tanh %56 : vector<2x32xf32>
    %58 = arith.mulf %53, %57 : vector<2x32xf32>
    %59 = vector.extract_strided_slice %44 {offsets = [0, 128], sizes = [2, 128], strides = [1, 1]} : vector<2x256xf32> to vector<2x128xf32>
    %60 = vector.extract_strided_slice %59 {offsets = [0, 0], sizes = [2, 32], strides = [1, 1]} : vector<2x128xf32> to vector<2x32xf32>
    %61 = vector.extract_strided_slice %59 {offsets = [0, 32], sizes = [2, 32], strides = [1, 1]} : vector<2x128xf32> to vector<2x32xf32>
    %62 = vector.extract_strided_slice %59 {offsets = [0, 64], sizes = [2, 32], strides = [1, 1]} : vector<2x128xf32> to vector<2x32xf32>
    %cst_22 = arith.constant 2.000000e+00 : f32
    %63 = vector.broadcast %cst_22 : f32 to vector<2x32xf32>
    %64 = arith.mulf %63, %62 : vector<2x32xf32>
    %cst_23 = arith.constant 1.000000e+00 : f32
    %65 = vector.broadcast %cst_23 : f32 to vector<2x32xf32>
    %66 = arith.subf %64, %65 : vector<2x32xf32>
    %67 = vector.extract_strided_slice %59 {offsets = [0, 96], sizes = [2, 32], strides = [1, 1]} : vector<2x128xf32> to vector<2x32xf32>
    %68 = arith.mulf %61, %34 : vector<2x32xf32>
    %69 = arith.mulf %60, %66 : vector<2x32xf32>
    %70 = arith.addf %68, %69 : vector<2x32xf32>
    %71 = math.tanh %70 : vector<2x32xf32>
    %72 = arith.mulf %67, %71 : vector<2x32xf32>
    %cst_24 = arith.constant dense<0.000000e+00> : vector<2x128xf32>
    %73 = tpu.matmul %58, %2, %cst_24 {dimension_numbers = #tpu.dot_dimension_numbers<[1], [0], [0], [1], [0, 0, 1, 1], [], []>} : vector<2x32xf32>, vector<32x128xf32>, vector<2x128xf32> -> vector<2x128xf32>
    %74 = vector.broadcast %3 : vector<1x128xf32> to vector<2x128xf32>
    %75 = arith.addf %73, %74 : vector<2x128xf32>
    %76 = tpu.concatenate %58, %72 in 1 : vector<2x32xf32>, vector<2x32xf32> -> vector<2x64xf32>
    %77 = vector.extract_strided_slice %9 {offsets = [4, 0], sizes = [2, 128], strides = [1, 1]} : vector<16x128xf32> to vector<2x128xf32>
    %78 = tpu.concatenate %77, %75 in 1 : vector<2x128xf32>, vector<2x128xf32> -> vector<2x256xf32>
    %cst_25 = arith.constant dense<0.000000e+00> : vector<2x256xf32>
    %79 = tpu.matmul %76, %4, %cst_25 {dimension_numbers = #tpu.dot_dimension_numbers<[1], [0], [0], [1], [0, 0, 1, 1], [], []>} : vector<2x64xf32>, vector<64x256xf32>, vector<2x256xf32> -> vector<2x256xf32>
    %80 = arith.addf %78, %79 : vector<2x256xf32>
    %81 = arith.negf %80 : vector<2x256xf32>
    %82 = math.exp %81 : vector<2x256xf32>
    %cst_26 = arith.constant 1.000000e+00 : f32
    %83 = vector.broadcast %cst_26 : f32 to vector<2x256xf32>
    %84 = arith.addf %83, %82 : vector<2x256xf32>
    %85 = arith.divf %83, %84 : vector<2x256xf32>
    %86 = vector.extract_strided_slice %85 {offsets = [0, 0], sizes = [2, 128], strides = [1, 1]} : vector<2x256xf32> to vector<2x128xf32>
    %87 = vector.extract_strided_slice %86 {offsets = [0, 0], sizes = [2, 32], strides = [1, 1]} : vector<2x128xf32> to vector<2x32xf32>
    %88 = vector.extract_strided_slice %86 {offsets = [0, 32], sizes = [2, 32], strides = [1, 1]} : vector<2x128xf32> to vector<2x32xf32>
    %89 = vector.extract_strided_slice %86 {offsets = [0, 64], sizes = [2, 32], strides = [1, 1]} : vector<2x128xf32> to vector<2x32xf32>
    %cst_27 = arith.constant 2.000000e+00 : f32
    %90 = vector.broadcast %cst_27 : f32 to vector<2x32xf32>
    %91 = arith.mulf %90, %89 : vector<2x32xf32>
    %cst_28 = arith.constant 1.000000e+00 : f32
    %92 = vector.broadcast %cst_28 : f32 to vector<2x32xf32>
    %93 = arith.subf %91, %92 : vector<2x32xf32>
    %94 = vector.extract_strided_slice %86 {offsets = [0, 96], sizes = [2, 32], strides = [1, 1]} : vector<2x128xf32> to vector<2x32xf32>
    %95 = arith.mulf %88, %56 : vector<2x32xf32>
    %96 = arith.mulf %87, %93 : vector<2x32xf32>
    %97 = arith.addf %95, %96 : vector<2x32xf32>
    %98 = math.tanh %97 : vector<2x32xf32>
    %99 = arith.mulf %94, %98 : vector<2x32xf32>
    %100 = vector.extract_strided_slice %85 {offsets = [0, 128], sizes = [2, 128], strides = [1, 1]} : vector<2x256xf32> to vector<2x128xf32>
    %101 = vector.extract_strided_slice %100 {offsets = [0, 0], sizes = [2, 32], strides = [1, 1]} : vector<2x128xf32> to vector<2x32xf32>
    %102 = vector.extract_strided_slice %100 {offsets = [0, 32], sizes = [2, 32], strides = [1, 1]} : vector<2x128xf32> to vector<2x32xf32>
    %103 = vector.extract_strided_slice %100 {offsets = [0, 64], sizes = [2, 32], strides = [1, 1]} : vector<2x128xf32> to vector<2x32xf32>
    %cst_29 = arith.constant 2.000000e+00 : f32
    %104 = vector.broadcast %cst_29 : f32 to vector<2x32xf32>
    %105 = arith.mulf %104, %103 : vector<2x32xf32>
    %cst_30 = arith.constant 1.000000e+00 : f32
    %106 = vector.broadcast %cst_30 : f32 to vector<2x32xf32>
    %107 = arith.subf %105, %106 : vector<2x32xf32>
    %108 = vector.extract_strided_slice %100 {offsets = [0, 96], sizes = [2, 32], strides = [1, 1]} : vector<2x128xf32> to vector<2x32xf32>
    %109 = arith.mulf %102, %70 : vector<2x32xf32>
    %110 = arith.mulf %101, %107 : vector<2x32xf32>
    %111 = arith.addf %109, %110 : vector<2x32xf32>
    %112 = math.tanh %111 : vector<2x32xf32>
    %113 = arith.mulf %108, %112 : vector<2x32xf32>
    %cst_31 = arith.constant dense<0.000000e+00> : vector<2x128xf32>
    %114 = tpu.matmul %99, %2, %cst_31 {dimension_numbers = #tpu.dot_dimension_numbers<[1], [0], [0], [1], [0, 0, 1, 1], [], []>} : vector<2x32xf32>, vector<32x128xf32>, vector<2x128xf32> -> vector<2x128xf32>
    %115 = vector.broadcast %3 : vector<1x128xf32> to vector<2x128xf32>
    %116 = arith.addf %114, %115 : vector<2x128xf32>
    %117 = tpu.concatenate %99, %113 in 1 : vector<2x32xf32>, vector<2x32xf32> -> vector<2x64xf32>
    %118 = vector.extract_strided_slice %9 {offsets = [6, 0], sizes = [2, 128], strides = [1, 1]} : vector<16x128xf32> to vector<2x128xf32>
    %119 = tpu.concatenate %118, %116 in 1 : vector<2x128xf32>, vector<2x128xf32> -> vector<2x256xf32>
    %cst_32 = arith.constant dense<0.000000e+00> : vector<2x256xf32>
    %120 = tpu.matmul %117, %4, %cst_32 {dimension_numbers = #tpu.dot_dimension_numbers<[1], [0], [0], [1], [0, 0, 1, 1], [], []>} : vector<2x64xf32>, vector<64x256xf32>, vector<2x256xf32> -> vector<2x256xf32>
    %121 = arith.addf %119, %120 : vector<2x256xf32>
    %122 = arith.negf %121 : vector<2x256xf32>
    %123 = math.exp %122 : vector<2x256xf32>
    %cst_33 = arith.constant 1.000000e+00 : f32
    %124 = vector.broadcast %cst_33 : f32 to vector<2x256xf32>
    %125 = arith.addf %124, %123 : vector<2x256xf32>
    %126 = arith.divf %124, %125 : vector<2x256xf32>
    %127 = vector.extract_strided_slice %126 {offsets = [0, 0], sizes = [2, 128], strides = [1, 1]} : vector<2x256xf32> to vector<2x128xf32>
    %128 = vector.extract_strided_slice %127 {offsets = [0, 0], sizes = [2, 32], strides = [1, 1]} : vector<2x128xf32> to vector<2x32xf32>
    %129 = vector.extract_strided_slice %127 {offsets = [0, 32], sizes = [2, 32], strides = [1, 1]} : vector<2x128xf32> to vector<2x32xf32>
    %130 = vector.extract_strided_slice %127 {offsets = [0, 64], sizes = [2, 32], strides = [1, 1]} : vector<2x128xf32> to vector<2x32xf32>
    %cst_34 = arith.constant 2.000000e+00 : f32
    %131 = vector.broadcast %cst_34 : f32 to vector<2x32xf32>
    %132 = arith.mulf %131, %130 : vector<2x32xf32>
    %cst_35 = arith.constant 1.000000e+00 : f32
    %133 = vector.broadcast %cst_35 : f32 to vector<2x32xf32>
    %134 = arith.subf %132, %133 : vector<2x32xf32>
    %135 = vector.extract_strided_slice %127 {offsets = [0, 96], sizes = [2, 32], strides = [1, 1]} : vector<2x128xf32> to vector<2x32xf32>
    %136 = arith.mulf %129, %97 : vector<2x32xf32>
    %137 = arith.mulf %128, %134 : vector<2x32xf32>
    %138 = arith.addf %136, %137 : vector<2x32xf32>
    %139 = math.tanh %138 : vector<2x32xf32>
    %140 = arith.mulf %135, %139 : vector<2x32xf32>
    %141 = vector.extract_strided_slice %126 {offsets = [0, 128], sizes = [2, 128], strides = [1, 1]} : vector<2x256xf32> to vector<2x128xf32>
    %142 = vector.extract_strided_slice %141 {offsets = [0, 0], sizes = [2, 32], strides = [1, 1]} : vector<2x128xf32> to vector<2x32xf32>
    %143 = vector.extract_strided_slice %141 {offsets = [0, 32], sizes = [2, 32], strides = [1, 1]} : vector<2x128xf32> to vector<2x32xf32>
    %144 = vector.extract_strided_slice %141 {offsets = [0, 64], sizes = [2, 32], strides = [1, 1]} : vector<2x128xf32> to vector<2x32xf32>
    %cst_36 = arith.constant 2.000000e+00 : f32
    %145 = vector.broadcast %cst_36 : f32 to vector<2x32xf32>
    %146 = arith.mulf %145, %144 : vector<2x32xf32>
    %cst_37 = arith.constant 1.000000e+00 : f32
    %147 = vector.broadcast %cst_37 : f32 to vector<2x32xf32>
    %148 = arith.subf %146, %147 : vector<2x32xf32>
    %149 = vector.extract_strided_slice %141 {offsets = [0, 96], sizes = [2, 32], strides = [1, 1]} : vector<2x128xf32> to vector<2x32xf32>
    %150 = arith.mulf %143, %111 : vector<2x32xf32>
    %151 = arith.mulf %142, %148 : vector<2x32xf32>
    %152 = arith.addf %150, %151 : vector<2x32xf32>
    %153 = math.tanh %152 : vector<2x32xf32>
    %154 = arith.mulf %149, %153 : vector<2x32xf32>
    %cst_38 = arith.constant dense<0.000000e+00> : vector<2x128xf32>
    %155 = tpu.matmul %140, %2, %cst_38 {dimension_numbers = #tpu.dot_dimension_numbers<[1], [0], [0], [1], [0, 0, 1, 1], [], []>} : vector<2x32xf32>, vector<32x128xf32>, vector<2x128xf32> -> vector<2x128xf32>
    %156 = vector.broadcast %3 : vector<1x128xf32> to vector<2x128xf32>
    %157 = arith.addf %155, %156 : vector<2x128xf32>
    %158 = tpu.concatenate %140, %154 in 1 : vector<2x32xf32>, vector<2x32xf32> -> vector<2x64xf32>
    %159 = vector.extract_strided_slice %9 {offsets = [8, 0], sizes = [2, 128], strides = [1, 1]} : vector<16x128xf32> to vector<2x128xf32>
    %160 = tpu.concatenate %159, %157 in 1 : vector<2x128xf32>, vector<2x128xf32> -> vector<2x256xf32>
    %cst_39 = arith.constant dense<0.000000e+00> : vector<2x256xf32>
    %161 = tpu.matmul %158, %4, %cst_39 {dimension_numbers = #tpu.dot_dimension_numbers<[1], [0], [0], [1], [0, 0, 1, 1], [], []>} : vector<2x64xf32>, vector<64x256xf32>, vector<2x256xf32> -> vector<2x256xf32>
    %162 = arith.addf %160, %161 : vector<2x256xf32>
    %163 = arith.negf %162 : vector<2x256xf32>
    %164 = math.exp %163 : vector<2x256xf32>
    %cst_40 = arith.constant 1.000000e+00 : f32
    %165 = vector.broadcast %cst_40 : f32 to vector<2x256xf32>
    %166 = arith.addf %165, %164 : vector<2x256xf32>
    %167 = arith.divf %165, %166 : vector<2x256xf32>
    %168 = vector.extract_strided_slice %167 {offsets = [0, 0], sizes = [2, 128], strides = [1, 1]} : vector<2x256xf32> to vector<2x128xf32>
    %169 = vector.extract_strided_slice %168 {offsets = [0, 0], sizes = [2, 32], strides = [1, 1]} : vector<2x128xf32> to vector<2x32xf32>
    %170 = vector.extract_strided_slice %168 {offsets = [0, 32], sizes = [2, 32], strides = [1, 1]} : vector<2x128xf32> to vector<2x32xf32>
    %171 = vector.extract_strided_slice %168 {offsets = [0, 64], sizes = [2, 32], strides = [1, 1]} : vector<2x128xf32> to vector<2x32xf32>
    %cst_41 = arith.constant 2.000000e+00 : f32
    %172 = vector.broadcast %cst_41 : f32 to vector<2x32xf32>
    %173 = arith.mulf %172, %171 : vector<2x32xf32>
    %cst_42 = arith.constant 1.000000e+00 : f32
    %174 = vector.broadcast %cst_42 : f32 to vector<2x32xf32>
    %175 = arith.subf %173, %174 : vector<2x32xf32>
    %176 = vector.extract_strided_slice %168 {offsets = [0, 96], sizes = [2, 32], strides = [1, 1]} : vector<2x128xf32> to vector<2x32xf32>
    %177 = arith.mulf %170, %138 : vector<2x32xf32>
    %178 = arith.mulf %169, %175 : vector<2x32xf32>
    %179 = arith.addf %177, %178 : vector<2x32xf32>
    %180 = math.tanh %179 : vector<2x32xf32>
    %181 = arith.mulf %176, %180 : vector<2x32xf32>
    %182 = vector.extract_strided_slice %167 {offsets = [0, 128], sizes = [2, 128], strides = [1, 1]} : vector<2x256xf32> to vector<2x128xf32>
    %183 = vector.extract_strided_slice %182 {offsets = [0, 0], sizes = [2, 32], strides = [1, 1]} : vector<2x128xf32> to vector<2x32xf32>
    %184 = vector.extract_strided_slice %182 {offsets = [0, 32], sizes = [2, 32], strides = [1, 1]} : vector<2x128xf32> to vector<2x32xf32>
    %185 = vector.extract_strided_slice %182 {offsets = [0, 64], sizes = [2, 32], strides = [1, 1]} : vector<2x128xf32> to vector<2x32xf32>
    %cst_43 = arith.constant 2.000000e+00 : f32
    %186 = vector.broadcast %cst_43 : f32 to vector<2x32xf32>
    %187 = arith.mulf %186, %185 : vector<2x32xf32>
    %cst_44 = arith.constant 1.000000e+00 : f32
    %188 = vector.broadcast %cst_44 : f32 to vector<2x32xf32>
    %189 = arith.subf %187, %188 : vector<2x32xf32>
    %190 = vector.extract_strided_slice %182 {offsets = [0, 96], sizes = [2, 32], strides = [1, 1]} : vector<2x128xf32> to vector<2x32xf32>
    %191 = arith.mulf %184, %152 : vector<2x32xf32>
    %192 = arith.mulf %183, %189 : vector<2x32xf32>
    %193 = arith.addf %191, %192 : vector<2x32xf32>
    %194 = math.tanh %193 : vector<2x32xf32>
    %195 = arith.mulf %190, %194 : vector<2x32xf32>
    %cst_45 = arith.constant dense<0.000000e+00> : vector<2x128xf32>
    %196 = tpu.matmul %181, %2, %cst_45 {dimension_numbers = #tpu.dot_dimension_numbers<[1], [0], [0], [1], [0, 0, 1, 1], [], []>} : vector<2x32xf32>, vector<32x128xf32>, vector<2x128xf32> -> vector<2x128xf32>
    %197 = vector.broadcast %3 : vector<1x128xf32> to vector<2x128xf32>
    %198 = arith.addf %196, %197 : vector<2x128xf32>
    %199 = tpu.concatenate %181, %195 in 1 : vector<2x32xf32>, vector<2x32xf32> -> vector<2x64xf32>
    %200 = vector.extract_strided_slice %9 {offsets = [10, 0], sizes = [2, 128], strides = [1, 1]} : vector<16x128xf32> to vector<2x128xf32>
    %201 = tpu.concatenate %200, %198 in 1 : vector<2x128xf32>, vector<2x128xf32> -> vector<2x256xf32>
    %cst_46 = arith.constant dense<0.000000e+00> : vector<2x256xf32>
    %202 = tpu.matmul %199, %4, %cst_46 {dimension_numbers = #tpu.dot_dimension_numbers<[1], [0], [0], [1], [0, 0, 1, 1], [], []>} : vector<2x64xf32>, vector<64x256xf32>, vector<2x256xf32> -> vector<2x256xf32>
    %203 = arith.addf %201, %202 : vector<2x256xf32>
    %204 = arith.negf %203 : vector<2x256xf32>
    %205 = math.exp %204 : vector<2x256xf32>
    %cst_47 = arith.constant 1.000000e+00 : f32
    %206 = vector.broadcast %cst_47 : f32 to vector<2x256xf32>
    %207 = arith.addf %206, %205 : vector<2x256xf32>
    %208 = arith.divf %206, %207 : vector<2x256xf32>
    %209 = vector.extract_strided_slice %208 {offsets = [0, 0], sizes = [2, 128], strides = [1, 1]} : vector<2x256xf32> to vector<2x128xf32>
    %210 = vector.extract_strided_slice %209 {offsets = [0, 0], sizes = [2, 32], strides = [1, 1]} : vector<2x128xf32> to vector<2x32xf32>
    %211 = vector.extract_strided_slice %209 {offsets = [0, 32], sizes = [2, 32], strides = [1, 1]} : vector<2x128xf32> to vector<2x32xf32>
    %212 = vector.extract_strided_slice %209 {offsets = [0, 64], sizes = [2, 32], strides = [1, 1]} : vector<2x128xf32> to vector<2x32xf32>
    %cst_48 = arith.constant 2.000000e+00 : f32
    %213 = vector.broadcast %cst_48 : f32 to vector<2x32xf32>
    %214 = arith.mulf %213, %212 : vector<2x32xf32>
    %cst_49 = arith.constant 1.000000e+00 : f32
    %215 = vector.broadcast %cst_49 : f32 to vector<2x32xf32>
    %216 = arith.subf %214, %215 : vector<2x32xf32>
    %217 = vector.extract_strided_slice %209 {offsets = [0, 96], sizes = [2, 32], strides = [1, 1]} : vector<2x128xf32> to vector<2x32xf32>
    %218 = arith.mulf %211, %179 : vector<2x32xf32>
    %219 = arith.mulf %210, %216 : vector<2x32xf32>
    %220 = arith.addf %218, %219 : vector<2x32xf32>
    %221 = math.tanh %220 : vector<2x32xf32>
    %222 = arith.mulf %217, %221 : vector<2x32xf32>
    %223 = vector.extract_strided_slice %208 {offsets = [0, 128], sizes = [2, 128], strides = [1, 1]} : vector<2x256xf32> to vector<2x128xf32>
    %224 = vector.extract_strided_slice %223 {offsets = [0, 0], sizes = [2, 32], strides = [1, 1]} : vector<2x128xf32> to vector<2x32xf32>
    %225 = vector.extract_strided_slice %223 {offsets = [0, 32], sizes = [2, 32], strides = [1, 1]} : vector<2x128xf32> to vector<2x32xf32>
    %226 = vector.extract_strided_slice %223 {offsets = [0, 64], sizes = [2, 32], strides = [1, 1]} : vector<2x128xf32> to vector<2x32xf32>
    %cst_50 = arith.constant 2.000000e+00 : f32
    %227 = vector.broadcast %cst_50 : f32 to vector<2x32xf32>
    %228 = arith.mulf %227, %226 : vector<2x32xf32>
    %cst_51 = arith.constant 1.000000e+00 : f32
    %229 = vector.broadcast %cst_51 : f32 to vector<2x32xf32>
    %230 = arith.subf %228, %229 : vector<2x32xf32>
    %231 = vector.extract_strided_slice %223 {offsets = [0, 96], sizes = [2, 32], strides = [1, 1]} : vector<2x128xf32> to vector<2x32xf32>
    %232 = arith.mulf %225, %193 : vector<2x32xf32>
    %233 = arith.mulf %224, %230 : vector<2x32xf32>
    %234 = arith.addf %232, %233 : vector<2x32xf32>
    %235 = math.tanh %234 : vector<2x32xf32>
    %236 = arith.mulf %231, %235 : vector<2x32xf32>
    %cst_52 = arith.constant dense<0.000000e+00> : vector<2x128xf32>
    %237 = tpu.matmul %222, %2, %cst_52 {dimension_numbers = #tpu.dot_dimension_numbers<[1], [0], [0], [1], [0, 0, 1, 1], [], []>} : vector<2x32xf32>, vector<32x128xf32>, vector<2x128xf32> -> vector<2x128xf32>
    %238 = vector.broadcast %3 : vector<1x128xf32> to vector<2x128xf32>
    %239 = arith.addf %237, %238 : vector<2x128xf32>
    %240 = tpu.concatenate %222, %236 in 1 : vector<2x32xf32>, vector<2x32xf32> -> vector<2x64xf32>
    %241 = vector.extract_strided_slice %9 {offsets = [12, 0], sizes = [2, 128], strides = [1, 1]} : vector<16x128xf32> to vector<2x128xf32>
    %242 = tpu.concatenate %241, %239 in 1 : vector<2x128xf32>, vector<2x128xf32> -> vector<2x256xf32>
    %cst_53 = arith.constant dense<0.000000e+00> : vector<2x256xf32>
    %243 = tpu.matmul %240, %4, %cst_53 {dimension_numbers = #tpu.dot_dimension_numbers<[1], [0], [0], [1], [0, 0, 1, 1], [], []>} : vector<2x64xf32>, vector<64x256xf32>, vector<2x256xf32> -> vector<2x256xf32>
    %244 = arith.addf %242, %243 : vector<2x256xf32>
    %245 = arith.negf %244 : vector<2x256xf32>
    %246 = math.exp %245 : vector<2x256xf32>
    %cst_54 = arith.constant 1.000000e+00 : f32
    %247 = vector.broadcast %cst_54 : f32 to vector<2x256xf32>
    %248 = arith.addf %247, %246 : vector<2x256xf32>
    %249 = arith.divf %247, %248 : vector<2x256xf32>
    %250 = vector.extract_strided_slice %249 {offsets = [0, 0], sizes = [2, 128], strides = [1, 1]} : vector<2x256xf32> to vector<2x128xf32>
    %251 = vector.extract_strided_slice %250 {offsets = [0, 0], sizes = [2, 32], strides = [1, 1]} : vector<2x128xf32> to vector<2x32xf32>
    %252 = vector.extract_strided_slice %250 {offsets = [0, 32], sizes = [2, 32], strides = [1, 1]} : vector<2x128xf32> to vector<2x32xf32>
    %253 = vector.extract_strided_slice %250 {offsets = [0, 64], sizes = [2, 32], strides = [1, 1]} : vector<2x128xf32> to vector<2x32xf32>
    %cst_55 = arith.constant 2.000000e+00 : f32
    %254 = vector.broadcast %cst_55 : f32 to vector<2x32xf32>
    %255 = arith.mulf %254, %253 : vector<2x32xf32>
    %cst_56 = arith.constant 1.000000e+00 : f32
    %256 = vector.broadcast %cst_56 : f32 to vector<2x32xf32>
    %257 = arith.subf %255, %256 : vector<2x32xf32>
    %258 = vector.extract_strided_slice %250 {offsets = [0, 96], sizes = [2, 32], strides = [1, 1]} : vector<2x128xf32> to vector<2x32xf32>
    %259 = arith.mulf %252, %220 : vector<2x32xf32>
    %260 = arith.mulf %251, %257 : vector<2x32xf32>
    %261 = arith.addf %259, %260 : vector<2x32xf32>
    %262 = math.tanh %261 : vector<2x32xf32>
    %263 = arith.mulf %258, %262 : vector<2x32xf32>
    %264 = vector.extract_strided_slice %249 {offsets = [0, 128], sizes = [2, 128], strides = [1, 1]} : vector<2x256xf32> to vector<2x128xf32>
    %265 = vector.extract_strided_slice %264 {offsets = [0, 0], sizes = [2, 32], strides = [1, 1]} : vector<2x128xf32> to vector<2x32xf32>
    %266 = vector.extract_strided_slice %264 {offsets = [0, 32], sizes = [2, 32], strides = [1, 1]} : vector<2x128xf32> to vector<2x32xf32>
    %267 = vector.extract_strided_slice %264 {offsets = [0, 64], sizes = [2, 32], strides = [1, 1]} : vector<2x128xf32> to vector<2x32xf32>
    %cst_57 = arith.constant 2.000000e+00 : f32
    %268 = vector.broadcast %cst_57 : f32 to vector<2x32xf32>
    %269 = arith.mulf %268, %267 : vector<2x32xf32>
    %cst_58 = arith.constant 1.000000e+00 : f32
    %270 = vector.broadcast %cst_58 : f32 to vector<2x32xf32>
    %271 = arith.subf %269, %270 : vector<2x32xf32>
    %272 = vector.extract_strided_slice %264 {offsets = [0, 96], sizes = [2, 32], strides = [1, 1]} : vector<2x128xf32> to vector<2x32xf32>
    %273 = arith.mulf %266, %234 : vector<2x32xf32>
    %274 = arith.mulf %265, %271 : vector<2x32xf32>
    %275 = arith.addf %273, %274 : vector<2x32xf32>
    %276 = math.tanh %275 : vector<2x32xf32>
    %277 = arith.mulf %272, %276 : vector<2x32xf32>
    %cst_59 = arith.constant dense<0.000000e+00> : vector<2x128xf32>
    %278 = tpu.matmul %263, %2, %cst_59 {dimension_numbers = #tpu.dot_dimension_numbers<[1], [0], [0], [1], [0, 0, 1, 1], [], []>} : vector<2x32xf32>, vector<32x128xf32>, vector<2x128xf32> -> vector<2x128xf32>
    %279 = vector.broadcast %3 : vector<1x128xf32> to vector<2x128xf32>
    %280 = arith.addf %278, %279 : vector<2x128xf32>
    %281 = tpu.concatenate %263, %277 in 1 : vector<2x32xf32>, vector<2x32xf32> -> vector<2x64xf32>
    %282 = vector.extract_strided_slice %9 {offsets = [14, 0], sizes = [2, 128], strides = [1, 1]} : vector<16x128xf32> to vector<2x128xf32>
    %283 = tpu.concatenate %282, %280 in 1 : vector<2x128xf32>, vector<2x128xf32> -> vector<2x256xf32>
    %cst_60 = arith.constant dense<0.000000e+00> : vector<2x256xf32>
    %284 = tpu.matmul %281, %4, %cst_60 {dimension_numbers = #tpu.dot_dimension_numbers<[1], [0], [0], [1], [0, 0, 1, 1], [], []>} : vector<2x64xf32>, vector<64x256xf32>, vector<2x256xf32> -> vector<2x256xf32>
    %285 = arith.addf %283, %284 : vector<2x256xf32>
    %286 = arith.negf %285 : vector<2x256xf32>
    %287 = math.exp %286 : vector<2x256xf32>
    %cst_61 = arith.constant 1.000000e+00 : f32
    %288 = vector.broadcast %cst_61 : f32 to vector<2x256xf32>
    %289 = arith.addf %288, %287 : vector<2x256xf32>
    %290 = arith.divf %288, %289 : vector<2x256xf32>
    %291 = vector.extract_strided_slice %290 {offsets = [0, 0], sizes = [2, 128], strides = [1, 1]} : vector<2x256xf32> to vector<2x128xf32>
    %292 = vector.extract_strided_slice %291 {offsets = [0, 0], sizes = [2, 32], strides = [1, 1]} : vector<2x128xf32> to vector<2x32xf32>
    %293 = vector.extract_strided_slice %291 {offsets = [0, 32], sizes = [2, 32], strides = [1, 1]} : vector<2x128xf32> to vector<2x32xf32>
    %294 = vector.extract_strided_slice %291 {offsets = [0, 64], sizes = [2, 32], strides = [1, 1]} : vector<2x128xf32> to vector<2x32xf32>
    %cst_62 = arith.constant 2.000000e+00 : f32
    %295 = vector.broadcast %cst_62 : f32 to vector<2x32xf32>
    %296 = arith.mulf %295, %294 : vector<2x32xf32>
    %cst_63 = arith.constant 1.000000e+00 : f32
    %297 = vector.broadcast %cst_63 : f32 to vector<2x32xf32>
    %298 = arith.subf %296, %297 : vector<2x32xf32>
    %299 = vector.extract_strided_slice %291 {offsets = [0, 96], sizes = [2, 32], strides = [1, 1]} : vector<2x128xf32> to vector<2x32xf32>
    %300 = arith.mulf %293, %261 : vector<2x32xf32>
    %301 = arith.mulf %292, %298 : vector<2x32xf32>
    %302 = arith.addf %300, %301 : vector<2x32xf32>
    %303 = math.tanh %302 : vector<2x32xf32>
    %304 = arith.mulf %299, %303 : vector<2x32xf32>
    %305 = vector.extract_strided_slice %290 {offsets = [0, 128], sizes = [2, 128], strides = [1, 1]} : vector<2x256xf32> to vector<2x128xf32>
    %306 = vector.extract_strided_slice %305 {offsets = [0, 0], sizes = [2, 32], strides = [1, 1]} : vector<2x128xf32> to vector<2x32xf32>
    %307 = vector.extract_strided_slice %305 {offsets = [0, 32], sizes = [2, 32], strides = [1, 1]} : vector<2x128xf32> to vector<2x32xf32>
    %308 = vector.extract_strided_slice %305 {offsets = [0, 64], sizes = [2, 32], strides = [1, 1]} : vector<2x128xf32> to vector<2x32xf32>
    %cst_64 = arith.constant 2.000000e+00 : f32
    %309 = vector.broadcast %cst_64 : f32 to vector<2x32xf32>
    %310 = arith.mulf %309, %308 : vector<2x32xf32>
    %cst_65 = arith.constant 1.000000e+00 : f32
    %311 = vector.broadcast %cst_65 : f32 to vector<2x32xf32>
    %312 = arith.subf %310, %311 : vector<2x32xf32>
    %313 = vector.extract_strided_slice %305 {offsets = [0, 96], sizes = [2, 32], strides = [1, 1]} : vector<2x128xf32> to vector<2x32xf32>
    %314 = arith.mulf %307, %275 : vector<2x32xf32>
    %315 = arith.mulf %306, %312 : vector<2x32xf32>
    %316 = arith.addf %314, %315 : vector<2x32xf32>
    %317 = math.tanh %316 : vector<2x32xf32>
    %318 = arith.mulf %313, %317 : vector<2x32xf32>
    %cst_66 = arith.constant dense<0.000000e+00> : vector<2x128xf32>
    %319 = tpu.matmul %304, %2, %cst_66 {dimension_numbers = #tpu.dot_dimension_numbers<[1], [0], [0], [1], [0, 0, 1, 1], [], []>} : vector<2x32xf32>, vector<32x128xf32>, vector<2x128xf32> -> vector<2x128xf32>
    %320 = vector.broadcast %3 : vector<1x128xf32> to vector<2x128xf32>
    %321 = arith.addf %319, %320 : vector<2x128xf32>
    %c32_67 = arith.constant 32 : index
    %c128 = arith.constant 128 : index
    %322 = vector.load %arg3[%c32_67, %c128] : memref<64x256xf32, #tpu.memory_space<vmem>>, vector<32x128xf32>
    %cst_68 = arith.constant dense<0.000000e+00> : vector<2x128xf32>
    %323 = tpu.matmul %318, %322, %cst_68 {dimension_numbers = #tpu.dot_dimension_numbers<[1], [0], [0], [1], [0, 0, 1, 1], [], []>} : vector<2x32xf32>, vector<32x128xf32>, vector<2x128xf32> -> vector<2x128xf32>
    %324 = arith.addf %321, %323 : vector<2x128xf32>
    %325 = arith.negf %324 : vector<2x128xf32>
    %326 = math.exp %325 : vector<2x128xf32>
    %cst_69 = arith.constant 1.000000e+00 : f32
    %327 = vector.broadcast %cst_69 : f32 to vector<2x128xf32>
    %328 = arith.addf %327, %326 : vector<2x128xf32>
    %329 = arith.divf %327, %328 : vector<2x128xf32>
    %330 = vector.extract_strided_slice %329 {offsets = [0, 0], sizes = [2, 32], strides = [1, 1]} : vector<2x128xf32> to vector<2x32xf32>
    %331 = vector.extract_strided_slice %329 {offsets = [0, 32], sizes = [2, 32], strides = [1, 1]} : vector<2x128xf32> to vector<2x32xf32>
    %332 = vector.extract_strided_slice %329 {offsets = [0, 64], sizes = [2, 32], strides = [1, 1]} : vector<2x128xf32> to vector<2x32xf32>
    %cst_70 = arith.constant 2.000000e+00 : f32
    %333 = vector.broadcast %cst_70 : f32 to vector<2x32xf32>
    %334 = arith.mulf %333, %332 : vector<2x32xf32>
    %cst_71 = arith.constant 1.000000e+00 : f32
    %335 = vector.broadcast %cst_71 : f32 to vector<2x32xf32>
    %336 = arith.subf %334, %335 : vector<2x32xf32>
    %337 = vector.extract_strided_slice %329 {offsets = [0, 96], sizes = [2, 32], strides = [1, 1]} : vector<2x128xf32> to vector<2x32xf32>
    %338 = arith.mulf %331, %316 : vector<2x32xf32>
    %339 = arith.mulf %330, %336 : vector<2x32xf32>
    %340 = arith.addf %338, %339 : vector<2x32xf32>
    %341 = math.tanh %340 : vector<2x32xf32>
    %342 = arith.mulf %337, %341 : vector<2x32xf32>
    %c72 = arith.constant 72 : index
    %c0_72 = arith.constant 0 : index
    %343 = vector.load %arg2[%c72, %c0_72] : memref<112x128xf32, #tpu.memory_space<vmem>>, vector<32x128xf32>
    %c104 = arith.constant 104 : index
    %c0_73 = arith.constant 0 : index
    %344 = vector.load %arg2[%c104, %c0_73] : memref<112x128xf32, #tpu.memory_space<vmem>>, vector<1x128xf32>
    %cst_74 = arith.constant dense<0.000000e+00> : vector<2x128xf32>
    %345 = tpu.matmul %342, %343, %cst_74 {dimension_numbers = #tpu.dot_dimension_numbers<[1], [0], [0], [1], [0, 0, 1, 1], [], []>} : vector<2x32xf32>, vector<32x128xf32>, vector<2x128xf32> -> vector<2x128xf32>
    %346 = vector.broadcast %344 : vector<1x128xf32> to vector<2x128xf32>
    %347 = arith.addf %345, %346 : vector<2x128xf32>
    %348 = vector.extract_strided_slice %347 {offsets = [0, 0], sizes = [2, 4], strides = [1, 1]} : vector<2x128xf32> to vector<2x4xf32>
    %c0_75 = arith.constant 0 : index
    %c0_76 = arith.constant 0 : index
    %349 = vector.load %arg4[%c0_75, %c0_76] : memref<2x4xf32, #tpu.memory_space<vmem>>, vector<2x4xf32>
    tpu.vector_store %arg4[%c0_75, %c0_76], %348 {strides = array<i32>} : memref<2x4xf32, #tpu.memory_space<vmem>>, vector<2x4xf32>,
    return
  }
}

</mosaic_0001>

<bundles_post_ra>
// kernel: cnn_lstm_forward.1
= control target key start
LH: loop header
LB: loop body
LE: loop exit
PB: predicated region body
PF: predicated region fallthrough
CT: control target
= control target key end

     0   :  { %9 = vsyncpa [#allocation3], 0  ;;  %s2175_s0 = inlined_call_operand.vmem [shape: f32[16,16], index: 0, kind: input, shape index: {}]   ;;  %s2176_s1 = inlined_call_operand.vmem [shape: f32[16,16], index: 1, kind: input, shape index: {}]   ;;  %s2177_s2 = inlined_call_operand.hbm [shape: f32[112,128], index: 2, kind: input, shape index: {}]   ;;  %s2178_s3 = inlined_call_operand.hbm [shape: f32[64,256], index: 3, kind: input, shape index: {}]   ;;  %s2179_s4 = inlined_call_operand.hbm [shape: f32[2,4], index: 4, kind: output, shape index: {}]  }
   0x1   :  { %10 = vsyncpa [#allocation6], 0 }
   0x2   :  { %11 = vsyncpa [#allocation4], 0  ;;  %s20_s17 = sshll.u32 %s2177_s2, 4  ;;  %s1751_s18 = smov [#allocation2]   ;;  %s21_s17 = int_to_ptr.hbm [resolvable:$true] %s20_s17 }
   0x3   :  { %s22_s19 = sshll.u32 %s1751_s18, 4  ;;  %s33_s22 = sshll.u32 %s2178_s3, 4  ;;  %s23_s19 = int_to_ptr.vmem [resolvable:$true] %s22_s19  ;;  %s34_s22 = int_to_ptr.hbm [resolvable:$true] %s33_s22 }
   0x4   :  { %s1752_s23 = smov 128   ;;  %s1753_s24 = smov 8  }
   0x5   :  { %28 = dma.hbm_to_vmem [thread:$0]  %s21_s17, 1792, %s23_s19, [#allocation3], %s1752_s23, %s1752_s23, %s1753_s24  }
   0x6   :  { %s1754_s25 = smov [#allocation5]   ;;  %s1755_s27 = smov 256  }
   0x7   :  { %s35_s26 = sshll.u32 %s1754_s25, 4  ;;  %s1756_s28 = smov 16   ;;  %s36_s26 = int_to_ptr.vmem [resolvable:$true] %s35_s26 }
   0x8   :  { %41 = dma.hbm_to_vmem [thread:$0]  %s34_s22, 2048, %s36_s26, [#allocation6], %s1755_s27, %s1755_s27, %s1756_s28  }
   0x9   :  { %1745 = dma.done.wait [#allocation3], 1792  }
   0xa   :  { %1746 = vsyncadd [#allocation3], 4294965504 }
   0xb   :  { %1747 = dma.done.wait [#allocation6], 2048  }
   0xc   :  { %1748 = vsyncadd [#allocation6], 4294965248  ;;  %v51_v0 = vld [vmem:[#allocation2 + $0x8] sm:$0xff]  ;;  %v50_v1 = vld [vmem:[#allocation2] sm:$0xff]  ;;  %vm77_vm0 = vcmask 130048   ;;  %s1758_s7 = smov 32  }
   0xd   :  { %98 = vmatpush.msra.mxu0 %v51_v0  ;;  %v75_v2 = vld [vmem:[%s2175_s0] sm:$0xff]  ;;  %v76_v3 = vld [vmem:[%s2175_s0 + $0x8] sm:$0xff]  ;;  %v52_v7 = vld [vmem:[#allocation2 + $0x10] sm:$0xff]  ;;  %s1757_s0 = smov 64   ;;  %vm180_vm5 = vcmask 261120   ;;  %vm208_vm6 = vcmask 523264  }
   0xe   :  { %v107_v6 = vld [vmem:[%s2176_s1] sm:$0xff]  ;;  %v1819_v32 = vld [vmem:[#allocation5 + $0x78] sm:$0xff]  ;;  %v1821_v33 = vld [vmem:[#allocation5 + $0x60] sm:$0xff]  ;;  %s1486_s13 = sshll.u32 %s2179_s4, 4  ;;  %s1487_s13 = int_to_ptr.hbm [resolvable:$true] %s1486_s13 }
   0xf   :  { %99 = vmatpush.msra.mxu0 %v50_v1  ;;  %v1817_v31 = vld [vmem:[#allocation5 + $0x70] sm:$0xff]  ;;  %v1825_v34 = vld [vmem:[#allocation5 + $0x68] sm:$0xff]  ;;  %v1829_v36 = vld [vmem:[#allocation5 + $0x58] sm:$0xff] }
  0x10   :  { %1497 = vmatmul.msk.f32.vlgmr.msra.gmra.mxu0 %vm77_vm0, %v75_v2  ;;  %220 = vmatpush.msra.mxu3 %v1817_v31  ;;  %v1827_v35 = vld [vmem:[#allocation5 + $0x50] sm:$0xff]  ;;  %v1831_v37 = vld [vmem:[#allocation2 + $0x38] sm:$0xff]  ;;  %v1836_v38 = vld [vmem:[#allocation2 + $0x30] sm:$0xff] }
  0x11   :  { %240 = vmatpush.msrb.mxu0 %v1819_v32  ;;  %v1838_v39 = vld [vmem:[#allocation5 + $0x40] sm:$0xff]  ;;  %v1840_v40 = vld [vmem:[#allocation5 + $0x48] sm:$0xff]  ;;  %195 = vmatpush.msra.mxu2 %v1831_v37  ;;  %v1846_v41 = vld [vmem:[#allocation2 + $0x28] sm:$0xff] }
  0x12   :  { %221 = vmatpush.msra.mxu3 %v1821_v33  ;;  %v1848_v42 = vld [vmem:[#allocation5 + $0x30] sm:$0xff]  ;;  %v1850_v43 = vld [vmem:[#allocation5 + $0x38] sm:$0xff]  ;;  %v1858_v45 = vld [vmem:[#allocation5 + $0x20] sm:$0xff] }
  0x13   :  { %241 = vmatpush.msrb.mxu0 %v1825_v34  ;;  %196 = vmatpush.msra.mxu2 %v1836_v38  ;;  %v1856_v44 = vld [vmem:[#allocation2 + $0x20] sm:$0xff]  ;;  %v1860_v46 = vld [vmem:[#allocation5 + $0x28] sm:$0xff]  ;;  %v1868_v48 = vld [vmem:[#allocation5 + $0x18] sm:$0xff] }
  0x14   :  { %222 = vmatpush.msra.mxu3 %v1827_v35  ;;  %v1866_v47 = vld [vmem:[#allocation5 + $0x10] sm:$0xff]  ;;  %v1884_v51 = vld [vmem:[#allocation5] sm:$0xff]  ;;  %v1886_v52 = vld [vmem:[#allocation5 + $0x8] sm:$0xff] }
  0x15   :  { %242 = vmatpush.msrb.mxu0 %v1829_v36  ;;  %197 = vmatpush.msra.mxu2 %v1846_v41  ;;  %v1931_v55 = vld [vmem:[#allocation2 + $0x40] ss:$0 sm:$0xff] }
  0x16   :  { %223 = vmatpush.msra.mxu3 %v1838_v39 }
  0x17   :  { %243 = vmatpush.msrb.mxu0 %v1840_v40  ;;  %198 = vmatpush.msra.mxu2 %v1856_v44 }
  0x18   :  { %1498 = vmatmul.msk.f32.gmra.mxu0 %vm77_vm0, %v76_v3  ;;  %224 = vmatpush.msra.mxu3 %v1848_v42 }
  0x19   :  { %244 = vmatpush.msrb.mxu0 %v1850_v43  ;;  %357 = vmatpush.msrb.mxu2 %v1831_v37 }
  0x1a   :  { %225 = vmatpush.msra.mxu3 %v1858_v45 }
  0x1b   :  { %245 = vmatpush.msrb.mxu0 %v1860_v46  ;;  %358 = vmatpush.msrb.mxu2 %v1836_v38 }
  0x1c   :  { %226 = vmatpush.msra.mxu3 %v1866_v47 }
  0x1d   :  { %246 = vmatpush.msrb.mxu0 %v1868_v48  ;;  %359 = vmatpush.msrb.mxu2 %v1846_v41 }
  0x1e   :  { %227 = vmatpush.msra.mxu3 %v1884_v51 }
  0x1f   :  { %360 = vmatpush.msrb.mxu2 %v1856_v44  ;;  %247 = vmatpush.msrb.mxu0 %v1886_v52 }
  0x20   :  { %528 = vmatpush.msrb.mxu3 %v1831_v37 }
  0x21   :  { %559 = vmatpush.msra.mxu0 %v1817_v31 }
  0x22   :  { %529 = vmatpush.msrb.mxu3 %v1836_v38 }
  0x23   :  { %560 = vmatpush.msra.mxu0 %v1821_v33 }
  0x24   :  { %530 = vmatpush.msrb.mxu3 %v1846_v41 }
  0x25   :  { %561 = vmatpush.msra.mxu0 %v1827_v35 }
  0x26   :  { %531 = vmatpush.msrb.mxu3 %v1856_v44 }
  0x27   :  { %562 = vmatpush.msra.mxu0 %v1838_v39 }
  0x29   :  { %563 = vmatpush.msra.mxu0 %v1848_v42 }
  0x2b   :  { %564 = vmatpush.msra.mxu0 %v1858_v45 }
  0x2d   :  { %565 = vmatpush.msra.mxu0 %v1866_v47 }
  0x2f   :  { %566 = vmatpush.msra.mxu0 %v1884_v51 }
  0x8d   :  { %v101_v4 = vpop.f32.mrf.mxu0 }
  0x95   :  { %v104_v5 = vpop.f32.mrf.mxu0 }
  0x96   :  { %129 = vmatpush.msra.mxu1 %v104_v5 }
  0x98   :  { %130 = vmatpush.msra.mxu1 %v101_v4 }
  0x99   :  { %1499 = vmatmul.msk.f32.vlgmr.msra.gmra.mxu1 %vm77_vm0, %v107_v6 }
  0x9a   :  { %388 = vmatpush.msrb.mxu1 %v1817_v31 }
  0x9c   :  { %389 = vmatpush.msrb.mxu1 %v1821_v33 }
  0x9e   :  { %390 = vmatpush.msrb.mxu1 %v1827_v35 }
  0xa0   :  { %391 = vmatpush.msrb.mxu1 %v1838_v39 }
  0xa2   :  { %392 = vmatpush.msrb.mxu1 %v1848_v42 }
  0xa4   :  { %393 = vmatpush.msrb.mxu1 %v1858_v45 }
  0xa6   :  { %394 = vmatpush.msrb.mxu1 %v1866_v47 }
  0xa8   :  { %395 = vmatpush.msrb.mxu1 %v1884_v51 }
  0xaa   :  { %579 = vmatpush.msra.mxu1 %v1819_v32 }
  0xac   :  { %580 = vmatpush.msra.mxu1 %v1825_v34 }
  0xae   :  { %581 = vmatpush.msra.mxu1 %v1829_v36 }
  0xb0   :  { %582 = vmatpush.msra.mxu1 %v1840_v40 }
  0xb2   :  { %583 = vmatpush.msra.mxu1 %v1850_v43 }
  0xb4   :  { %584 = vmatpush.msra.mxu1 %v1860_v46 }
  0xb6   :  { %585 = vmatpush.msra.mxu1 %v1868_v48 }
  0xb8   :  { %586 = vmatpush.msra.mxu1 %v1886_v52 }
 0x116   :  { %v132_v8 = vpop.f32.mrf.mxu1 }
 0x117   :  { %v1803_v9 = vadd.f32 %v132_v8, %v52_v7 }
 0x119   :  { %v1501_v10 = vmul.f32 -1.442695, %v1803_v9 }
 0x11b   :  { %1568 = vpow2.f32 %v1501_v10 }
 0x121   :  { %v1569_v11 = vpop.eup %1568 }
 0x122   :  { %v141_v12 = vadd.f32 1.0, %v1569_v11 }
 0x124   :  { %1570 = vrcp.f32 %v141_v12  ;;  %v153_v16 = vand.u32 2147483648, %v141_v12  ;;  %v151_v18 = vand.u32 2147483647, %v141_v12  ;;  %vm147_vm2 = vweird.f32 %v141_v12 }
 0x126   :  { %v154_v20 = vor.u32 1.1754944e-38, %v153_v16  ;;  %vm152_vm4 = vcmp.eq.f32.partialorder %v151_v18, 8.507059e+37 }
 0x12a   :  { %v1571_v13 = vpop.eup %1570 }
 0x12b   :  { %v143_v14 = vmul.f32 %v1571_v13, %v141_v12  ;;  %vm148_vm1 = vweird.f32 %v1571_v13 }
 0x12c   :  { %vm149_vm3 = vmor %vm147_vm2, %vm148_vm1 }
 0x12d   :  { %v144_v15 = vsub.f32 1.0, %v143_v14 }
 0x12f   :  { %v145_v17 = vmul.f32 %v1571_v13, %v144_v15 }
 0x131   :  { %v146_v19 = vadd.f32 %v1571_v13, %v145_v17 }
 0x133   :  { %v150_v21 = vsel %vm149_vm3, %v1571_v13, %v146_v19 }
 0x134   :  { %v1806_v22 = vsel %vm152_vm4, %v154_v20, %v150_v21 }
 0x135   :  { %v157_v23 = vmul.f32 2.0, %v1806_v22  ;;  %v159_v27 = vmul.f32 0.0, %v1806_v22 }
 0x137   :  { %v1502_v24 = vadd.f32 -1.0, %v157_v23 }
 0x139   :  { %161 = vrot.lane.b32.xlu0 %v1502_v24, %s1757_s0 }
 0x1ab   :  { %v162_v25 = vpop.permute.xlu0 %161 }
 0x1ac   :  { %v164_v26 = vmul.f32 %v162_v25, %v1806_v22 }
 0x1ae   :  { %166 = vrot.lane.b32.xlu0 %v164_v26, %s1758_s7 }
 0x220   :  { %v167_v28 = vpop.permute.xlu0 %166 }
 0x221   :  { %v1813_v29 = vadd.f32 %v167_v28, %v159_v27 }
 0x223   :  { %1572 = vtanh.f32 %v1813_v29 }
 0x229   :  { %v1573_v30 = vpop.eup %1572 }
 0x22a   :  { %172 = vrot.lane.b32.xlu1 %v1573_v30, %s1757_s0 }
 0x29c   :  { %v173_v49 = vpop.permute.xlu1 %172 }
 0x29d   :  { %v175_v50 = vmul.f32 %v173_v49, %v1806_v22 }
 0x29f   :  { %178 = vrot.lane.b32.xlu1 %v175_v50, %s1758_s7 }
 0x311   :  { %v179_v53 = vpop.permute.xlu1 %178 }
 0x312   :  { %1503 = vmatmul.msk.f32.vlgmr.msra.gmra.mxu2 %vm180_vm5, %v179_v53  ;;  %v204_v54 = vsel %vm180_vm5, %v179_v53, 0.0 }
 0x313   :  { %1504 = vmatmul.msk.f32.vlgmr.msra.gmra.mxu3 %vm208_vm6, %v204_v54  ;;  %1505 = vmatmul.msk.f32.vlgmr.msrb.gmra.mxu0 %vm208_vm6, %v204_v54 }
 0x314   :  { %408 = vmatpush.msra.mxu2 %v1819_v32  ;;  %699 = vmatpush.msra.mxu3 %v1831_v37 }
 0x315   :  { %860 = vmatpush.msrb.mxu0 %v1831_v37 }
 0x316   :  { %409 = vmatpush.msra.mxu2 %v1825_v34  ;;  %700 = vmatpush.msra.mxu3 %v1836_v38 }
 0x317   :  { %861 = vmatpush.msrb.mxu0 %v1836_v38 }
 0x318   :  { %410 = vmatpush.msra.mxu2 %v1829_v36  ;;  %701 = vmatpush.msra.mxu3 %v1846_v41 }
 0x319   :  { %862 = vmatpush.msrb.mxu0 %v1846_v41 }
 0x31a   :  { %411 = vmatpush.msra.mxu2 %v1840_v40  ;;  %702 = vmatpush.msra.mxu3 %v1856_v44 }
 0x31b   :  { %863 = vmatpush.msrb.mxu0 %v1856_v44 }
 0x31c   :  { %412 = vmatpush.msra.mxu2 %v1850_v43 }
 0x31e   :  { %413 = vmatpush.msra.mxu2 %v1860_v46 }
 0x320   :  { %414 = vmatpush.msra.mxu2 %v1868_v48 }
 0x322   :  { %415 = vmatpush.msra.mxu2 %v1886_v52 }
 0x390   :  { %v249_v56 = vpop.f32.mrf.mxu0 }
 0x391   :  { %v255_v61 = vrot.slane %v249_v56, 6 }
 0x395   :  { %v200_v57 = vpop.f32.mrf.mxu2 }
 0x396   :  { %v201_v58 = vadd.f32 %v1931_v55, %v200_v57  ;;  %v229_v59 = vpop.f32.mrf.mxu3 }
 0x397   :  { %v254_v60 = vrot.slane %v229_v59, 6 }
 0x398   :  { %v206_v62 = vrot.slane %v201_v58, 6  ;;  %v301_v58 = vrot.slane %v1813_v29, 6 }
 0x399   :  { %v258_v63 = vadd.f32 %v254_v60, %v1803_v9 }
 0x39a   :  { %v259_v0 = vadd.f32 %v255_v61, %v206_v62 }
 0x39b   :  { %v1506_v1 = vmul.f32 -1.442695, %v258_v63 }
 0x39c   :  { %v1507_v2 = vmul.f32 -1.442695, %v259_v0 }
 0x39d   :  { %1574 = vpow2.f32 %v1506_v1 }
 0x39e   :  { %1576 = vpow2.f32 %v1507_v2 }
 0x3a3   :  { %v1575_v3 = vpop.eup %1574 }
 0x3a4   :  { %v1577_v4 = vpop.eup %1576  ;;  %v266_v5 = vadd.f32 1.0, %v1575_v3 }
 0x3a5   :  { %v267_v6 = vadd.f32 1.0, %v1577_v4 }
 0x3a6   :  { %1578 = vrcp.f32 %v266_v5  ;;  %v279_v14 = vand.u32 2147483648, %v266_v5  ;;  %v277_v16 = vand.u32 2147483647, %v266_v5  ;;  %vm273_vm8 = vweird.f32 %v266_v5 }
 0x3a7   :  { %1580 = vrcp.f32 %v267_v6  ;;  %v294_v21 = vand.u32 2147483648, %v267_v6  ;;  %vm288_vm12 = vweird.f32 %v267_v6  ;;  %v292_v23 = vand.u32 2147483647, %v267_v6 }
 0x3a8   :  { %v280_v19 = vor.u32 1.1754944e-38, %v279_v14  ;;  %vm278_vm11 = vcmp.eq.f32.partialorder %v277_v16, 8.507059e+37 }
 0x3a9   :  { %v295_v27 = vor.u32 1.1754944e-38, %v294_v21  ;;  %vm293_vm14 = vcmp.eq.f32.partialorder %v292_v23, 8.507059e+37 }
 0x3ac   :  { %v1579_v7 = vpop.eup %1578 }
 0x3ad   :  { %v1581_v8 = vpop.eup %1580  ;;  %v269_v10 = vmul.f32 %v1579_v7, %v266_v5  ;;  %vm274_vm7 = vweird.f32 %v1579_v7 }
 0x3ae   :  { %v284_v11 = vmul.f32 %v1581_v8, %v267_v6  ;;  %vm289_vm9 = vweird.f32 %v1581_v8  ;;  %vm275_vm10 = vmor %vm273_vm8, %vm274_vm7 }
 0x3af   :  { %v270_v12 = vsub.f32 1.0, %v269_v10  ;;  %vm290_vm13 = vmor %vm288_vm12, %vm289_vm9 }
 0x3b0   :  { %v285_v13 = vsub.f32 1.0, %v284_v11 }
 0x3b1   :  { %v271_v15 = vmul.f32 %v1579_v7, %v270_v12 }
 0x3b2   :  { %v286_v17 = vmul.f32 %v1581_v8, %v285_v13 }
 0x3b3   :  { %v272_v18 = vadd.f32 %v1579_v7, %v271_v15 }
 0x3b4   :  { %v287_v20 = vadd.f32 %v1581_v8, %v286_v17 }
 0x3b5   :  { %v276_v22 = vsel %vm275_vm10, %v1579_v7, %v272_v18  ;;  %v108_v7 = vld [vmem:[%s2176_s1 + $0x8] sm:$0xff]  ;;  %s1759_s1 = smov [#allocation7]  }
 0x3b6   :  { %v281_v24 = vsel %vm278_vm11, %v280_v19, %v276_v22  ;;  %v291_v26 = vsel %vm290_vm13, %v1581_v8, %v287_v20  ;;  %1500 = vmatmul.msk.f32.gmra.mxu1 %vm77_vm0, %v108_v7  ;;  %s1484_s10 = sshll.u32 %s1759_s1, 4  ;;  %s1485_s10 = int_to_ptr.vmem [resolvable:$true] %s1484_s10 }
 0x3b7   :  { %v298_v25 = vmul.f32 2.0, %v281_v24  ;;  %v296_v30 = vsel %vm293_vm14, %v295_v27, %v291_v26  ;;  %v303_v59 = vmul.f32 %v301_v58, %v281_v24 }
 0x3b8   :  { %v320_v49 = vmul.f32 2.0, %v296_v30  ;;  %v322_v62 = vmul.f32 0.0, %v296_v30 }
 0x3b9   :  { %v1508_v28 = vadd.f32 -1.0, %v298_v25 }
 0x3ba   :  { %v1509_v50 = vadd.f32 -1.0, %v320_v49 }
 0x3bb   :  { %305 = vrot.lane.b32.xlu2 %v1508_v28, %s1757_s0 }
 0x3c3   :  { %324 = vrot.lane.b32.xlu2 %v1509_v50, %s1757_s0 }
 0x415   :  { %v306_v53 = vpop.permute.xlu2 %305 }
 0x416   :  { %v308_v54 = vmul.f32 %v306_v53, %v281_v24 }
 0x418   :  { %310 = vrot.lane.b32.xlu0 %v308_v54, %s1758_s7 }
 0x41d   :  { %v325_v56 = vpop.permute.xlu2 %324 }
 0x41e   :  { %v327_v57 = vmul.f32 %v325_v56, %v296_v30 }
 0x420   :  { %329 = vrot.lane.b32.xlu1 %v327_v57, %s1758_s7 }
 0x433   :  { %v1979_v14 = vpop.f32.mrf.mxu1 }
 0x48a   :  { %v311_v60 = vpop.permute.xlu0 %310 }
 0x48b   :  { %v1940_v61 = vadd.f32 %v311_v60, %v303_v59 }
 0x48d   :  { %1582 = vtanh.f32 %v1940_v61 }
 0x492   :  { %v330_v63 = vpop.permute.xlu1 %329 }
 0x493   :  { %v1583_v0 = vpop.eup %1582  ;;  %v1943_v1 = vadd.f32 %v330_v63, %v322_v62 }
 0x494   :  { %316 = vrot.lane.b32.xlu2 %v1583_v0, %s1757_s0 }
 0x495   :  { %1584 = vtanh.f32 %v1943_v1 }
 0x49b   :  { %v1585_v2 = vpop.eup %1584 }
 0x49c   :  { %335 = vrot.lane.b32.xlu0 %v1585_v2, %s1757_s0 }
 0x4ee   :  { %v317_v3 = vpop.permute.xlu2 %316 }
 0x4ef   :  { %v319_v29 = vmul.f32 %v317_v3, %v281_v24 }
 0x4f1   :  { %v340_v4 = vrot.slane %v319_v29, 2  ;;  %365 = vrot.lane.b32.xlu2 %v319_v29, %s1758_s7 }
 0x4f3   :  { %341 = vrot.lane.b32.xlu1 %v340_v4, %s1758_s7 }
 0x50e   :  { %v336_v5 = vpop.permute.xlu0 %335 }
 0x50f   :  { %v338_v6 = vmul.f32 %v336_v5, %v296_v30 }
 0x511   :  { %369 = vrot.lane.b32.xlu0 %v338_v6, %s1757_s0 }
 0x54b   :  { %v366_v10 = vpop.permute.xlu2 %365 }
 0x565   :  { %v342_v8 = vpop.permute.xlu1 %341 }
 0x566   :  { %1510 = vmatmul.msk.f32.vlgmr.msrb.gmra.mxu2 %vm180_vm5, %v342_v8 }
 0x567   :  { %727 = vmatpush.msrb.mxu2 %v1817_v31 }
 0x569   :  { %728 = vmatpush.msrb.mxu2 %v1821_v33 }
 0x56b   :  { %729 = vmatpush.msrb.mxu2 %v1827_v35 }
 0x56d   :  { %730 = vmatpush.msrb.mxu2 %v1838_v39 }
 0x56f   :  { %731 = vmatpush.msrb.mxu2 %v1848_v42 }
 0x571   :  { %732 = vmatpush.msrb.mxu2 %v1858_v45 }
 0x573   :  { %733 = vmatpush.msrb.mxu2 %v1866_v47 }
 0x575   :  { %734 = vmatpush.msrb.mxu2 %v1884_v51 }
 0x583   :  { %v370_v11 = vpop.permute.xlu0 %369 }
 0x584   :  { %v372_v12 = vsel %vm180_vm5, %v366_v10, %v370_v11 }
 0x585   :  { %v377_v13 = vrot.slane %v372_v12, 2 }
 0x587   :  { %1511 = vmatmul.msk.f32.vlgmr.msrb.gmra.mxu1 %vm208_vm6, %v377_v13  ;;  %1512 = vmatmul.msk.f32.vlgmr.msra.gmra.mxu2 %vm208_vm6, %v377_v13 }
 0x588   :  { %888 = vmatpush.msrb.mxu1 %v1817_v31  ;;  %1028 = vmatpush.msra.mxu2 %v1831_v37 }
 0x58a   :  { %889 = vmatpush.msrb.mxu1 %v1821_v33  ;;  %1029 = vmatpush.msra.mxu2 %v1836_v38 }
 0x58c   :  { %890 = vmatpush.msrb.mxu1 %v1827_v35  ;;  %1030 = vmatpush.msra.mxu2 %v1846_v41 }
 0x58e   :  { %891 = vmatpush.msrb.mxu1 %v1838_v39  ;;  %1031 = vmatpush.msra.mxu2 %v1856_v44 }
 0x590   :  { %892 = vmatpush.msrb.mxu1 %v1848_v42 }
 0x592   :  { %893 = vmatpush.msrb.mxu1 %v1858_v45 }
 0x594   :  { %894 = vmatpush.msrb.mxu1 %v1866_v47 }
 0x596   :  { %895 = vmatpush.msrb.mxu1 %v1884_v51 }
 0x5e9   :  { %v362_v15 = vpop.f32.mrf.mxu2 }
 0x5ea   :  { %v363_v18 = vadd.f32 %v1931_v55, %v362_v15 }
 0x5ec   :  { %v374_v22 = vrot.slane %v363_v18, 4 }
 0x604   :  { %v397_v16 = vpop.f32.mrf.mxu1 }
 0x605   :  { %v422_v17 = vrot.slane %v397_v16, 4 }
 0x607   :  { %v426_v19 = vadd.f32 %v422_v17, %v1803_v9 }
 0x609   :  { %v1513_v20 = vmul.f32 -1.442695, %v426_v19  ;;  %v491_v19 = vrot.slane %v1943_v1, 6 }
 0x60a   :  { %v417_v21 = vpop.f32.mrf.mxu2 }
 0x60b   :  { %1586 = vpow2.f32 %v1513_v20  ;;  %v423_v23 = vrot.slane %v417_v21, 4 }
 0x60d   :  { %v427_v24 = vadd.f32 %v423_v23, %v374_v22 }
 0x60f   :  { %v1514_v25 = vmul.f32 -1.442695, %v427_v24  ;;  %v469_v24 = vrot.slane %v1940_v61, 6 }
 0x611   :  { %v1587_v26 = vpop.eup %1586  ;;  %1588 = vpow2.f32 %v1514_v25 }
 0x612   :  { %v434_v27 = vadd.f32 1.0, %v1587_v26 }
 0x614   :  { %1590 = vrcp.f32 %v434_v27  ;;  %v447_v54 = vand.u32 2147483648, %v434_v27  ;;  %v445_v57 = vand.u32 2147483647, %v434_v27  ;;  %vm441_vm0 = vweird.f32 %v434_v27 }
 0x616   :  { %v448_v62 = vor.u32 1.1754944e-38, %v447_v54  ;;  %vm446_vm2 = vcmp.eq.f32.partialorder %v445_v57, 8.507059e+37 }
 0x617   :  { %v1589_v28 = vpop.eup %1588 }
 0x618   :  { %v435_v30 = vadd.f32 1.0, %v1589_v28 }
 0x61a   :  { %v1591_v49 = vpop.eup %1590  ;;  %1592 = vrcp.f32 %v435_v30  ;;  %v462_v3 = vand.u32 2147483648, %v435_v30  ;;  %v460_v5 = vand.u32 2147483647, %v435_v30  ;;  %vm456_vm4 = vweird.f32 %v435_v30 }
 0x61b   :  { %v437_v50 = vmul.f32 %v1591_v49, %v434_v27  ;;  %vm442_vm15 = vweird.f32 %v1591_v49 }
 0x61c   :  { %vm443_vm1 = vmor %vm441_vm0, %vm442_vm15  ;;  %v463_v8 = vor.u32 1.1754944e-38, %v462_v3  ;;  %vm461_vm8 = vcmp.eq.f32.partialorder %v460_v5, 8.507059e+37 }
 0x61d   :  { %v438_v53 = vsub.f32 1.0, %v437_v50 }
 0x61f   :  { %v439_v56 = vmul.f32 %v1591_v49, %v438_v53 }
 0x620   :  { %v1593_v58 = vpop.eup %1592 }
 0x621   :  { %v452_v59 = vmul.f32 %v1593_v58, %v435_v30  ;;  %v440_v60 = vadd.f32 %v1591_v49, %v439_v56  ;;  %vm457_vm3 = vweird.f32 %v1593_v58 }
 0x622   :  { %vm458_vm7 = vmor %vm456_vm4, %vm457_vm3 }
 0x623   :  { %v453_v63 = vsub.f32 1.0, %v452_v59  ;;  %v444_v0 = vsel %vm443_vm1, %v1591_v49, %v440_v60 }
 0x624   :  { %v449_v2 = vsel %vm446_vm2, %v448_v62, %v444_v0 }
 0x625   :  { %v466_v29 = vmul.f32 2.0, %v449_v2  ;;  %v454_v4 = vmul.f32 %v1593_v58, %v453_v63  ;;  %v471_v25 = vmul.f32 %v469_v24, %v449_v2 }
 0x627   :  { %v1515_v6 = vadd.f32 -1.0, %v466_v29  ;;  %v455_v7 = vadd.f32 %v1593_v58, %v454_v4 }
 0x629   :  { %473 = vrot.lane.b32.xlu1 %v1515_v6, %s1757_s0  ;;  %v459_v10 = vsel %vm458_vm7, %v1593_v58, %v455_v7 }
 0x62a   :  { %v464_v11 = vsel %vm461_vm8, %v463_v8, %v459_v10 }
 0x62b   :  { %v488_v12 = vmul.f32 2.0, %v464_v11  ;;  %v493_v20 = vmul.f32 %v491_v19, %v464_v11 }
 0x62d   :  { %v1516_v13 = vadd.f32 -1.0, %v488_v12 }
 0x62f   :  { %495 = vrot.lane.b32.xlu2 %v1516_v13, %s1757_s0 }
 0x689   :  { %v496_v15 = vpop.permute.xlu2 %495 }
 0x68a   :  { %v498_v16 = vmul.f32 %v496_v15, %v464_v11 }
 0x68c   :  { %500 = vrot.lane.b32.xlu1 %v498_v16, %s1758_s7 }
 0x69b   :  { %v474_v17 = vpop.permute.xlu1 %473 }
 0x69c   :  { %v476_v18 = vmul.f32 %v474_v17, %v449_v2 }
 0x69e   :  { %478 = vrot.lane.b32.xlu0 %v476_v18, %s1758_s7 }
 0x6fe   :  { %v501_v21 = vpop.permute.xlu1 %500 }
 0x6ff   :  { %v1988_v22 = vadd.f32 %v501_v21, %v493_v20 }
 0x701   :  { %1594 = vtanh.f32 %v1988_v22 }
 0x707   :  { %v1595_v23 = vpop.eup %1594 }
 0x708   :  { %506 = vrot.lane.b32.xlu0 %v1595_v23, %s1757_s0 }
 0x710   :  { %v479_v26 = vpop.permute.xlu0 %478 }
 0x711   :  { %v1993_v27 = vadd.f32 %v479_v26, %v471_v25 }
 0x713   :  { %1596 = vtanh.f32 %v1993_v27 }
 0x719   :  { %v1597_v28 = vpop.eup %1596 }
 0x71a   :  { %484 = vrot.lane.b32.xlu2 %v1597_v28, %s1757_s0 }
 0x774   :  { %v485_v1 = vpop.permute.xlu2 %484 }
 0x775   :  { %v487_v30 = vmul.f32 %v485_v1, %v449_v2 }
 0x777   :  { %v511_v49 = vrot.slane %v487_v30, 4  ;;  %536 = vrot.lane.b32.xlu2 %v487_v30, %s1758_s7 }
 0x779   :  { %512 = vrot.lane.b32.xlu1 %v511_v49, %s1758_s7 }
 0x77a   :  { %v507_v50 = vpop.permute.xlu0 %506 }
 0x77b   :  { %v509_v53 = vmul.f32 %v507_v50, %v464_v11 }
 0x77d   :  { %540 = vrot.lane.b32.xlu0 %v509_v53, %s1757_s0 }
 0x7d1   :  { %v537_v54 = vpop.permute.xlu2 %536 }
 0x7eb   :  { %v513_v61 = vpop.permute.xlu1 %512 }
 0x7ec   :  { %1517 = vmatmul.msk.f32.vlgmr.msrb.gmra.mxu3 %vm180_vm5, %v513_v61 }
 0x7ed   :  { %747 = vmatpush.msrb.mxu3 %v1819_v32 }
 0x7ef   :  { %v541_v56 = vpop.permute.xlu0 %540  ;;  %748 = vmatpush.msrb.mxu3 %v1825_v34 }
 0x7f0   :  { %v543_v57 = vsel %vm180_vm5, %v537_v54, %v541_v56 }
 0x7f1   :  { %v548_v58 = vrot.slane %v543_v57, 4  ;;  %749 = vmatpush.msrb.mxu3 %v1829_v36 }
 0x7f3   :  { %1518 = vmatmul.msk.f32.vlgmr.msra.gmra.mxu0 %vm208_vm6, %v548_v58  ;;  %1519 = vmatmul.msk.f32.vlgmr.msra.gmra.mxu1 %vm208_vm6, %v548_v58  ;;  %v662_v58 = vrot.slane %v1988_v22, 6 }
 0x7f4   :  { %750 = vmatpush.msrb.mxu3 %v1840_v40  ;;  %908 = vmatpush.msra.mxu0 %v1819_v32 }
 0x7f5   :  { %1079 = vmatpush.msra.mxu1 %v1819_v32 }
 0x7f6   :  { %751 = vmatpush.msrb.mxu3 %v1850_v43  ;;  %909 = vmatpush.msra.mxu0 %v1825_v34 }
 0x7f7   :  { %1080 = vmatpush.msra.mxu1 %v1825_v34 }
 0x7f8   :  { %752 = vmatpush.msrb.mxu3 %v1860_v46  ;;  %910 = vmatpush.msra.mxu0 %v1829_v36 }
 0x7f9   :  { %1081 = vmatpush.msra.mxu1 %v1829_v36 }
 0x7fa   :  { %753 = vmatpush.msrb.mxu3 %v1868_v48  ;;  %911 = vmatpush.msra.mxu0 %v1840_v40 }
 0x7fb   :  { %1082 = vmatpush.msra.mxu1 %v1840_v40 }
 0x7fc   :  { %754 = vmatpush.msrb.mxu3 %v1886_v52  ;;  %912 = vmatpush.msra.mxu0 %v1850_v43 }
 0x7fd   :  { %1083 = vmatpush.msra.mxu1 %v1850_v43 }
 0x7fe   :  { %913 = vmatpush.msra.mxu0 %v1860_v46 }
 0x7ff   :  { %1084 = vmatpush.msra.mxu1 %v1860_v46 }
 0x800   :  { %914 = vmatpush.msra.mxu0 %v1868_v48 }
 0x801   :  { %1085 = vmatpush.msra.mxu1 %v1868_v48 }
 0x802   :  { %915 = vmatpush.msra.mxu0 %v1886_v52 }
 0x803   :  { %1086 = vmatpush.msra.mxu1 %v1886_v52 }
 0x86f   :  { %v533_v59 = vpop.f32.mrf.mxu3 }
 0x870   :  { %v534_v60 = vadd.f32 %v1931_v55, %v533_v59  ;;  %v568_v62 = vpop.f32.mrf.mxu0  ;;  %v588_v63 = vpop.f32.mrf.mxu1 }
 0x871   :  { %v593_v0 = vrot.slane %v568_v62, 2  ;;  %v594_v2 = vrot.slane %v588_v63, 2 }
 0x872   :  { %v545_v43 = vrot.slane %v534_v60, 2 }
 0x873   :  { %v597_v3 = vadd.f32 %v593_v0, %v1803_v9  ;;  %v640_v0 = vrot.slane %v1993_v27, 6 }
 0x874   :  { %v598_v29 = vadd.f32 %v594_v2, %v545_v43 }
 0x875   :  { %v1520_v46 = vmul.f32 -1.442695, %v597_v3 }
 0x876   :  { %v1521_v4 = vmul.f32 -1.442695, %v598_v29 }
 0x877   :  { %1598 = vpow2.f32 %v1520_v46 }
 0x878   :  { %1600 = vpow2.f32 %v1521_v4 }
 0x87d   :  { %v1599_v48 = vpop.eup %1598 }
 0x87e   :  { %v1601_v5 = vpop.eup %1600  ;;  %v605_v6 = vadd.f32 1.0, %v1599_v48 }
 0x87f   :  { %v606_v7 = vadd.f32 1.0, %v1601_v5 }
 0x880   :  { %1602 = vrcp.f32 %v605_v6  ;;  %v618_v15 = vand.u32 2147483648, %v605_v6  ;;  %v616_v9 = vand.u32 2147483647, %v605_v6  ;;  %vm612_vm11 = vweird.f32 %v605_v6 }
 0x881   :  { %1604 = vrcp.f32 %v606_v7  ;;  %v633_v17 = vand.u32 2147483648, %v606_v7  ;;  %v631_v19 = vand.u32 2147483647, %v606_v7  ;;  %vm627_vm13 = vweird.f32 %v606_v7 }
 0x882   :  { %v619_v21 = vor.u32 1.1754944e-38, %v618_v15  ;;  %vm617_vm14 = vcmp.eq.f32.partialorder %v616_v9, 8.507059e+37 }
 0x883   :  { %v634_v25 = vor.u32 1.1754944e-38, %v633_v17  ;;  %vm632_vm0 = vcmp.eq.f32.partialorder %v631_v19, 8.507059e+37 }
 0x886   :  { %v1603_v52 = vpop.eup %1602 }
 0x887   :  { %v1605_v8 = vpop.eup %1604  ;;  %v608_v10 = vmul.f32 %v1603_v52, %v605_v6  ;;  %vm613_vm9 = vweird.f32 %v1603_v52 }
 0x888   :  { %v623_v11 = vmul.f32 %v1605_v8, %v606_v7  ;;  %vm628_vm10 = vweird.f32 %v1605_v8  ;;  %vm614_vm12 = vmor %vm612_vm11, %vm613_vm9 }
 0x889   :  { %v609_v12 = vsub.f32 1.0, %v608_v10  ;;  %vm629_vm15 = vmor %vm627_vm13, %vm628_vm10  ;;  %v53_v10 = vld [vmem:[#allocation2 + $0x18] sm:$0xff] }
 0x88a   :  { %v624_v13 = vsub.f32 1.0, %v623_v11  ;;  %v2068_v11 = vadd.f32 %v1979_v14, %v53_v10 }
 0x88b   :  { %v610_v16 = vmul.f32 %v1603_v52, %v609_v12 }
 0x88c   :  { %v625_v18 = vmul.f32 %v1605_v8, %v624_v13 }
 0x88d   :  { %v611_v20 = vadd.f32 %v1603_v52, %v610_v16 }
 0x88e   :  { %v626_v23 = vadd.f32 %v1605_v8, %v625_v18 }
 0x88f   :  { %v615_v24 = vsel %vm614_vm12, %v1603_v52, %v611_v20 }
 0x890   :  { %v620_v26 = vsel %vm617_vm14, %v619_v21, %v615_v24  ;;  %v630_v28 = vsel %vm629_vm15, %v1605_v8, %v626_v23 }
 0x891   :  { %v637_v1 = vmul.f32 2.0, %v620_v26  ;;  %v635_v30 = vsel %vm632_vm0, %v634_v25, %v630_v28  ;;  %v642_v2 = vmul.f32 %v640_v0, %v620_v26 }
 0x892   :  { %v659_v49 = vmul.f32 2.0, %v635_v30  ;;  %v664_v59 = vmul.f32 %v662_v58, %v635_v30 }
 0x893   :  { %v1522_v50 = vadd.f32 -1.0, %v637_v1 }
 0x894   :  { %v1523_v53 = vadd.f32 -1.0, %v659_v49 }
 0x895   :  { %644 = vrot.lane.b32.xlu1 %v1522_v50, %s1757_s0 }
 0x896   :  { %666 = vrot.lane.b32.xlu2 %v1523_v53, %s1757_s0 }
 0x8f0   :  { %v667_v61 = vpop.permute.xlu2 %666 }
 0x8f1   :  { %v669_v54 = vmul.f32 %v667_v61, %v635_v30 }
 0x8f3   :  { %671 = vrot.lane.b32.xlu1 %v669_v54, %s1758_s7 }
 0x907   :  { %v645_v56 = vpop.permute.xlu1 %644 }
 0x908   :  { %v647_v57 = vmul.f32 %v645_v56, %v620_v26 }
 0x90a   :  { %649 = vrot.lane.b32.xlu0 %v647_v57, %s1758_s7 }
 0x965   :  { %v672_v60 = vpop.permute.xlu1 %671 }
 0x966   :  { %v2035_v62 = vadd.f32 %v672_v60, %v664_v59 }
 0x968   :  { %1606 = vtanh.f32 %v2035_v62 }
 0x96e   :  { %v1607_v63 = vpop.eup %1606 }
 0x96f   :  { %677 = vrot.lane.b32.xlu0 %v1607_v63, %s1757_s0 }
 0x97c   :  { %v650_v43 = vpop.permute.xlu0 %649 }
 0x97d   :  { %v2040_v3 = vadd.f32 %v650_v43, %v642_v2 }
 0x97f   :  { %1608 = vtanh.f32 %v2040_v3 }
 0x985   :  { %v1609_v29 = vpop.eup %1608 }
 0x986   :  { %655 = vrot.lane.b32.xlu2 %v1609_v29, %s1757_s0 }
 0x9e0   :  { %v656_v22 = vpop.permute.xlu2 %655 }
 0x9e1   :  { %v658_v46 = vmul.f32 %v656_v22, %v620_v26  ;;  %v678_v4 = vpop.permute.xlu0 %677 }
 0x9e2   :  { %v680_v48 = vmul.f32 %v678_v4, %v635_v30 }
 0x9e3   :  { %v682_v5 = vrot.slane %v658_v46, 6  ;;  %707 = vrot.lane.b32.xlu1 %v658_v46, %s1758_s7 }
 0x9e4   :  { %711 = vrot.lane.b32.xlu2 %v680_v48, %s1757_s0  ;;  %v824_v48 = vrot.slane %v2035_v62, 6 }
 0x9e5   :  { %683 = vrot.lane.b32.xlu0 %v682_v5, %s1758_s7 }
 0xa3e   :  { %v712_v27 = vpop.permute.xlu2 %711 }
 0xa55   :  { %v708_v6 = vpop.permute.xlu1 %707 }
 0xa56   :  { %v714_v7 = vsel %vm180_vm5, %v708_v6, %v712_v27 }
 0xa57   :  { %v716_v52 = vrot.slane %v714_v7, 6  ;;  %v684_v8 = vpop.permute.xlu0 %683 }
 0xa58   :  { %1524 = vmatmul.msk.f32.vlgmr.msra.gmra.mxu3 %vm180_vm5, %v684_v8 }
 0xa59   :  { %1525 = vmatmul.msk.f32.vlgmr.msrb.gmra.mxu2 %vm208_vm6, %v716_v52  ;;  %1059 = vmatpush.msra.mxu3 %v1817_v31 }
 0xa5a   :  { %1199 = vmatpush.msrb.mxu2 %v1831_v37 }
 0xa5b   :  { %1060 = vmatpush.msra.mxu3 %v1821_v33 }
 0xa5c   :  { %1200 = vmatpush.msrb.mxu2 %v1836_v38 }
 0xa5d   :  { %1061 = vmatpush.msra.mxu3 %v1827_v35 }
 0xa5e   :  { %1201 = vmatpush.msrb.mxu2 %v1846_v41 }
 0xa5f   :  { %1062 = vmatpush.msra.mxu3 %v1838_v39 }
 0xa60   :  { %1526 = vmatmul.msk.f32.vlgmr.msrb.gmra.mxu3 %vm208_vm6, %v716_v52  ;;  %1202 = vmatpush.msrb.mxu2 %v1856_v44  ;;  %v802_v52 = vrot.slane %v2040_v3, 6 }
 0xa61   :  { %1063 = vmatpush.msra.mxu3 %v1848_v42 }
 0xa63   :  { %1064 = vmatpush.msra.mxu3 %v1858_v45 }
 0xa65   :  { %1065 = vmatpush.msra.mxu3 %v1866_v47 }
 0xa67   :  { %1066 = vmatpush.msra.mxu3 %v1884_v51 }
 0xa69   :  { %1370 = vmatpush.msrb.mxu3 %v1831_v37 }
 0xa6b   :  { %1371 = vmatpush.msrb.mxu3 %v1836_v38 }
 0xa6d   :  { %1372 = vmatpush.msrb.mxu3 %v1846_v41 }
 0xa6f   :  { %1373 = vmatpush.msrb.mxu3 %v1856_v44 }
 0xadb   :  { %v704_v12 = vpop.f32.mrf.mxu3 }
 0xadc   :  { %v736_v13 = vpop.f32.mrf.mxu2  ;;  %v705_v9 = vadd.f32 %v1931_v55, %v704_v12 }
 0xadd   :  { %v759_v15 = vadd.f32 %v736_v13, %v2068_v11 }
 0xadf   :  { %v1527_v16 = vmul.f32 -1.442695, %v759_v15 }
 0xae1   :  { %1610 = vpow2.f32 %v1527_v16 }
 0xae3   :  { %v756_v17 = vpop.f32.mrf.mxu3 }
 0xae4   :  { %v760_v37 = vadd.f32 %v756_v17, %v705_v9 }
 0xae6   :  { %v1528_v18 = vmul.f32 -1.442695, %v760_v37 }
 0xae7   :  { %v1611_v38 = vpop.eup %1610 }
 0xae8   :  { %v767_v19 = vadd.f32 1.0, %v1611_v38  ;;  %1612 = vpow2.f32 %v1528_v18 }
 0xaea   :  { %1614 = vrcp.f32 %v767_v19  ;;  %v780_v23 = vand.u32 2147483648, %v767_v19  ;;  %v778_v25 = vand.u32 2147483647, %v767_v19  ;;  %vm774_vm2 = vweird.f32 %v767_v19 }
 0xaec   :  { %v781_v30 = vor.u32 1.1754944e-38, %v780_v23  ;;  %vm779_vm4 = vcmp.eq.f32.partialorder %v778_v25, 8.507059e+37 }
 0xaee   :  { %v1613_v41 = vpop.eup %1612 }
 0xaef   :  { %v768_v44 = vadd.f32 1.0, %v1613_v41 }
 0xaf0   :  { %v1615_v20 = vpop.eup %1614 }
 0xaf1   :  { %v770_v14 = vmul.f32 %v1615_v20, %v767_v19  ;;  %1616 = vrcp.f32 %v768_v44  ;;  %vm775_vm1 = vweird.f32 %v1615_v20  ;;  %v795_v54 = vand.u32 2147483648, %v768_v44 }
 0xaf2   :  { %vm776_vm3 = vmor %vm774_vm2, %vm775_vm1  ;;  %v793_v57 = vand.u32 2147483647, %v768_v44  ;;  %vm789_vm8 = vweird.f32 %v768_v44 }
 0xaf3   :  { %v771_v21 = vsub.f32 1.0, %v770_v14  ;;  %v796_v60 = vor.u32 1.1754944e-38, %v795_v54 }
 0xaf4   :  { %vm794_vm10 = vcmp.eq.f32.partialorder %v793_v57, 8.507059e+37 }
 0xaf5   :  { %v772_v24 = vmul.f32 %v1615_v20, %v771_v21 }
 0xaf7   :  { %v1617_v26 = vpop.eup %1616  ;;  %v773_v28 = vadd.f32 %v1615_v20, %v772_v24 }
 0xaf8   :  { %v785_v1 = vmul.f32 %v1617_v26, %v768_v44  ;;  %vm790_vm7 = vweird.f32 %v1617_v26 }
 0xaf9   :  { %v777_v49 = vsel %vm776_vm3, %v1615_v20, %v773_v28  ;;  %vm791_vm9 = vmor %vm789_vm8, %vm790_vm7 }
 0xafa   :  { %v786_v50 = vsub.f32 1.0, %v785_v1  ;;  %v782_v53 = vsel %vm779_vm4, %v781_v30, %v777_v49 }
 0xafb   :  { %v799_v61 = vmul.f32 2.0, %v782_v53  ;;  %v804_v8 = vmul.f32 %v802_v52, %v782_v53 }
 0xafc   :  { %v787_v56 = vmul.f32 %v1617_v26, %v786_v50 }
 0xafd   :  { %v1529_v58 = vadd.f32 -1.0, %v799_v61 }
 0xafe   :  { %v788_v59 = vadd.f32 %v1617_v26, %v787_v56 }
 0xaff   :  { %806 = vrot.lane.b32.xlu1 %v1529_v58, %s1757_s0 }
 0xb00   :  { %v792_v63 = vsel %vm791_vm9, %v1617_v26, %v788_v59 }
 0xb01   :  { %v797_v0 = vsel %vm794_vm10, %v796_v60, %v792_v63 }
 0xb02   :  { %v821_v2 = vmul.f32 2.0, %v797_v0  ;;  %v826_v5 = vmul.f32 %v824_v48, %v797_v0 }
 0xb04   :  { %v1530_v43 = vadd.f32 -1.0, %v821_v2 }
 0xb06   :  { %828 = vrot.lane.b32.xlu2 %v1530_v43, %s1757_s0 }
 0xb60   :  { %v829_v29 = vpop.permute.xlu2 %828 }
 0xb61   :  { %v831_v22 = vmul.f32 %v829_v29, %v797_v0 }
 0xb63   :  { %833 = vrot.lane.b32.xlu1 %v831_v22, %s1758_s7 }
 0xb71   :  { %v807_v46 = vpop.permute.xlu1 %806 }
 0xb72   :  { %v809_v4 = vmul.f32 %v807_v46, %v782_v53 }
 0xb74   :  { %811 = vrot.lane.b32.xlu0 %v809_v4, %s1758_s7 }
 0xbd5   :  { %v834_v27 = vpop.permute.xlu1 %833 }
 0xbd6   :  { %v2077_v6 = vadd.f32 %v834_v27, %v826_v5 }
 0xbd8   :  { %1618 = vtanh.f32 %v2077_v6  ;;  %v991_v27 = vrot.slane %v2077_v6, 6 }
 0xbde   :  { %v1619_v7 = vpop.eup %1618 }
 0xbdf   :  { %839 = vrot.lane.b32.xlu0 %v1619_v7, %s1757_s0 }
 0xbe6   :  { %v812_v10 = vpop.permute.xlu0 %811 }
 0xbe7   :  { %v2082_v12 = vadd.f32 %v812_v10, %v804_v8 }
 0xbe9   :  { %1620 = vtanh.f32 %v2082_v12  ;;  %v969_v22 = vrot.slane %v2082_v12, 6 }
 0xbef   :  { %v1621_v13 = vpop.eup %1620 }
 0xbf0   :  { %817 = vrot.lane.b32.xlu2 %v1621_v13, %s1757_s0 }
 0xc4a   :  { %v818_v62 = vpop.permute.xlu2 %817 }
 0xc4b   :  { %v820_v15 = vmul.f32 %v818_v62, %v782_v53 }
 0xc4d   :  { %844 = vrot.lane.b32.xlu1 %v820_v15, %s1758_s7 }
 0xc51   :  { %v840_v16 = vpop.permute.xlu0 %839 }
 0xc52   :  { %v842_v9 = vmul.f32 %v840_v16, %v797_v0 }
 0xc54   :  { %870 = vrot.lane.b32.xlu2 %v842_v9, %s1757_s0  ;;  %v1664_v9 = vld [vmem:[#allocation5 + $0x78] sm:$0xff] }
 0xcae   :  { %v871_v17 = vpop.permute.xlu2 %870 }
 0xcbf   :  { %v845_v37 = vpop.permute.xlu1 %844 }
 0xcc0   :  { %v873_v3 = vsel %vm180_vm5, %v845_v37, %v871_v17  ;;  %1531 = vmatmul.msk.f32.vlgmr.msrb.gmra.mxu0 %vm180_vm5, %v845_v37  ;;  %v1665_v17 = vld [vmem:[#allocation5 + $0x68] sm:$0xff]  ;;  %v1666_v37 = vld [vmem:[#allocation5 + $0x58] sm:$0xff] }
 0xcc1   :  { %1532 = vmatmul.msk.f32.vlgmr.msrb.gmra.mxu1 %vm208_vm6, %v873_v3  ;;  %1230 = vmatpush.msrb.mxu0 %v1817_v31 }
 0xcc2   :  { %1396 = vmatpush.msrb.mxu1 %v1819_v32 }
 0xcc3   :  { %1231 = vmatpush.msrb.mxu0 %v1821_v33 }
 0xcc4   :  { %1397 = vmatpush.msrb.mxu1 %v1825_v34 }
 0xcc5   :  { %1232 = vmatpush.msrb.mxu0 %v1827_v35 }
 0xcc6   :  { %1398 = vmatpush.msrb.mxu1 %v1829_v36 }
 0xcc7   :  { %1233 = vmatpush.msrb.mxu0 %v1838_v39 }
 0xcc8   :  { %1533 = vmatmul.msk.f32.vlgmr.msra.gmra.mxu0 %vm208_vm6, %v873_v3  ;;  %1399 = vmatpush.msrb.mxu1 %v1840_v40  ;;  %v1667_v3 = vld [vmem:[#allocation5 + $0x48] sm:$0xff] }
 0xcc9   :  { %1234 = vmatpush.msrb.mxu0 %v1848_v42 }
 0xccb   :  { %1235 = vmatpush.msrb.mxu0 %v1858_v45 }
 0xccd   :  { %1236 = vmatpush.msrb.mxu0 %v1866_v47 }
 0xccf   :  { %1237 = vmatpush.msrb.mxu0 %v1884_v51 }
 0xd3d   :  { %v865_v31 = vpop.f32.mrf.mxu0 }
 0xd3e   :  { %v897_v32 = vpop.f32.mrf.mxu1  ;;  %v866_v35 = vadd.f32 %v1931_v55, %v865_v31  ;;  %v1668_v31 = vld [vmem:[#allocation5 + $0x38] sm:$0xff] }
 0xd3f   :  { %v922_v33 = vrot.slane %v897_v32, 6  ;;  %v1669_v32 = vld [vmem:[#allocation5 + $0x28] sm:$0xff] }
 0xd40   :  { %v875_v18 = vrot.slane %v866_v35, 6 }
 0xd41   :  { %v926_v34 = vadd.f32 %v922_v33, %v2068_v11  ;;  %v1670_v33 = vld [vmem:[#allocation5 + $0x18] sm:$0xff] }
 0xd43   :  { %v1534_v36 = vmul.f32 -1.442695, %v926_v34  ;;  %v1671_v34 = vld [vmem:[#allocation5 + $0x8] sm:$0xff] }
 0xd45   :  { %1622 = vpow2.f32 %v1534_v36  ;;  %v917_v39 = vpop.f32.mrf.mxu0 }
 0xd46   :  { %v923_v40 = vrot.slane %v917_v39, 6 }
 0xd48   :  { %v927_v38 = vadd.f32 %v923_v40, %v875_v18 }
 0xd4a   :  { %v1535_v42 = vmul.f32 -1.442695, %v927_v38  ;;  %v2127_v38 = vld [vmem:[#allocation2 + $0x40] ss:$0 sm:$0xff] }
 0xd4b   :  { %v1623_v19 = vpop.eup %1622 }
 0xd4c   :  { %v934_v45 = vadd.f32 1.0, %v1623_v19  ;;  %1624 = vpow2.f32 %v1535_v42 }
 0xd4e   :  { %1626 = vrcp.f32 %v934_v45  ;;  %v947_v14 = vand.u32 2147483648, %v934_v45  ;;  %v945_v55 = vand.u32 2147483647, %v934_v45  ;;  %vm941_vm12 = vweird.f32 %v934_v45 }
 0xd50   :  { %v948_v26 = vor.u32 1.1754944e-38, %v947_v14  ;;  %vm946_vm14 = vcmp.eq.f32.partialorder %v945_v55, 8.507059e+37 }
 0xd52   :  { %v1625_v47 = vpop.eup %1624 }
 0xd53   :  { %v935_v51 = vadd.f32 1.0, %v1625_v47 }
 0xd54   :  { %v1627_v41 = vpop.eup %1626 }
 0xd55   :  { %v937_v44 = vmul.f32 %v1627_v41, %v934_v45  ;;  %1628 = vrcp.f32 %v935_v51  ;;  %vm942_vm11 = vweird.f32 %v1627_v41  ;;  %v962_v50 = vand.u32 2147483648, %v935_v51 }
 0xd56   :  { %vm943_vm13 = vmor %vm941_vm12, %vm942_vm11  ;;  %v960_v61 = vand.u32 2147483647, %v935_v51  ;;  %vm956_vm0 = vweird.f32 %v935_v51 }
 0xd57   :  { %v938_v20 = vsub.f32 1.0, %v937_v44  ;;  %v963_v57 = vor.u32 1.1754944e-38, %v962_v50 }
 0xd58   :  { %vm961_vm2 = vcmp.eq.f32.partialorder %v960_v61, 8.507059e+37 }
 0xd59   :  { %v939_v21 = vmul.f32 %v1627_v41, %v938_v20 }
 0xd5b   :  { %v1629_v23 = vpop.eup %1628  ;;  %v940_v24 = vadd.f32 %v1627_v41, %v939_v21 }
 0xd5c   :  { %v952_v25 = vmul.f32 %v1629_v23, %v935_v51  ;;  %vm957_vm15 = vweird.f32 %v1629_v23 }
 0xd5d   :  { %v944_v28 = vsel %vm943_vm13, %v1627_v41, %v940_v24  ;;  %vm958_vm1 = vmor %vm956_vm0, %vm957_vm15 }
 0xd5e   :  { %v953_v1 = vsub.f32 1.0, %v952_v25  ;;  %v949_v30 = vsel %vm946_vm14, %v948_v26, %v944_v28 }
 0xd5f   :  { %v966_v49 = vmul.f32 2.0, %v949_v30  ;;  %v971_v46 = vmul.f32 %v969_v22, %v949_v30 }
 0xd60   :  { %v954_v53 = vmul.f32 %v1629_v23, %v953_v1 }
 0xd61   :  { %v1536_v54 = vadd.f32 -1.0, %v966_v49 }
 0xd62   :  { %v955_v56 = vadd.f32 %v1629_v23, %v954_v53 }
 0xd63   :  { %973 = vrot.lane.b32.xlu0 %v1536_v54, %s1757_s0 }
 0xd64   :  { %v959_v58 = vsel %vm958_vm1, %v1629_v23, %v955_v56 }
 0xd65   :  { %v964_v59 = vsel %vm961_vm2, %v963_v57, %v959_v58 }
 0xd66   :  { %v988_v60 = vmul.f32 2.0, %v964_v59  ;;  %v993_v7 = vmul.f32 %v991_v27, %v964_v59 }
 0xd68   :  { %v1537_v63 = vadd.f32 -1.0, %v988_v60 }
 0xd6a   :  { %995 = vrot.lane.b32.xlu1 %v1537_v63, %s1757_s0 }
 0xdd5   :  { %v974_v0 = vpop.permute.xlu0 %973 }
 0xdd6   :  { %v976_v2 = vmul.f32 %v974_v0, %v949_v30 }
 0xdd8   :  { %978 = vrot.lane.b32.xlu2 %v976_v2, %s1758_s7 }
 0xddc   :  { %v996_v43 = vpop.permute.xlu1 %995 }
 0xddd   :  { %v998_v29 = vmul.f32 %v996_v43, %v964_v59 }
 0xddf   :  { %1000 = vrot.lane.b32.xlu0 %v998_v29, %s1758_s7 }
 0xe32   :  { %v979_v4 = vpop.permute.xlu2 %978 }
 0xe33   :  { %v2111_v48 = vadd.f32 %v979_v4, %v971_v46 }
 0xe35   :  { %1630 = vtanh.f32 %v2111_v48 }
 0xe3b   :  { %v1631_v5 = vpop.eup %1630 }
 0xe3c   :  { %984 = vrot.lane.b32.xlu1 %v1631_v5, %s1757_s0 }
 0xe51   :  { %v1001_v52 = vpop.permute.xlu0 %1000 }
 0xe52   :  { %v2116_v8 = vadd.f32 %v1001_v52, %v993_v7 }
 0xe54   :  { %1632 = vtanh.f32 %v2116_v8 }
 0xe5a   :  { %v1633_v10 = vpop.eup %1632 }
 0xe5b   :  { %1006 = vrot.lane.b32.xlu2 %v1633_v10, %s1757_s0 }
 0xeae   :  { %v985_v12 = vpop.permute.xlu1 %984 }
 0xeaf   :  { %v987_v13 = vmul.f32 %v985_v12, %v949_v30 }
 0xeb1   :  { %v1011_v62 = vrot.slane %v987_v13, 2  ;;  %1036 = vrot.lane.b32.xlu0 %v987_v13, %s1758_s7  ;;  %v1140_v13 = vrot.slane %v2111_v48, 6 }
 0xeb3   :  { %1012 = vrot.lane.b32.xlu2 %v1011_v62, %s1758_s7 }
 0xeb5   :  { %v1007_v15 = vpop.permute.xlu2 %1006 }
 0xeb6   :  { %v1009_v16 = vmul.f32 %v1007_v15, %v964_v59 }
 0xeb8   :  { %1040 = vrot.lane.b32.xlu1 %v1009_v16, %s1757_s0 }
 0xf0d   :  { %v1013_v6 = vpop.permute.xlu2 %1012 }
 0xf0e   :  { %1538 = vmatmul.msk.f32.vlgmr.msra.gmra.mxu2 %vm180_vm5, %v1013_v6 }
 0xf0f   :  { %1250 = vmatpush.msra.mxu2 %v1664_v9  ;;  %v1162_v9 = vrot.slane %v2116_v8, 6 }
 0xf11   :  { %1251 = vmatpush.msra.mxu2 %v1665_v17 }
 0xf13   :  { %1252 = vmatpush.msra.mxu2 %v1666_v37 }
 0xf15   :  { %1253 = vmatpush.msra.mxu2 %v1667_v3 }
 0xf17   :  { %1254 = vmatpush.msra.mxu2 %v1668_v31 }
 0xf19   :  { %1255 = vmatpush.msra.mxu2 %v1669_v32 }
 0xf1b   :  { %1256 = vmatpush.msra.mxu2 %v1670_v33 }
 0xf1d   :  { %1257 = vmatpush.msra.mxu2 %v1671_v34 }
 0xf23   :  { %v1037_v35 = vpop.permute.xlu0 %1036 }
 0xf2a   :  { %v1041_v36 = vpop.permute.xlu1 %1040 }
 0xf2b   :  { %v1043_v39 = vsel %vm180_vm5, %v1037_v35, %v1041_v36 }
 0xf2c   :  { %v1048_v18 = vrot.slane %v1043_v39, 2 }
 0xf2e   :  { %1539 = vmatmul.msk.f32.vlgmr.msra.gmra.mxu3 %vm208_vm6, %v1048_v18  ;;  %1540 = vmatmul.msk.f32.vlgmr.msra.gmra.mxu1 %vm208_vm6, %v1048_v18 }
 0xf91   :  { %v1033_v40 = vpop.f32.mrf.mxu2 }
 0xf92   :  { %v1034_v42 = vadd.f32 %v2127_v38, %v1033_v40 }
 0xf94   :  { %v1045_v45 = vrot.slane %v1034_v42, 4 }
 0xfab   :  { %v1088_v19 = vpop.f32.mrf.mxu1 }
 0xfac   :  { %v1094_v47 = vrot.slane %v1088_v19, 4 }
 0xfae   :  { %v1098_v51 = vadd.f32 %v1094_v47, %v1045_v45 }
 0xfb0   :  { %v1542_v41 = vmul.f32 -1.442695, %v1098_v51 }
 0xfb1   :  { %v1068_v44 = vpop.f32.mrf.mxu3 }
 0xfb2   :  { %1634 = vpow2.f32 %v1542_v41  ;;  %v1093_v20 = vrot.slane %v1068_v44, 4 }
 0xfb4   :  { %v1097_v14 = vadd.f32 %v1093_v20, %v2068_v11 }
 0xfb6   :  { %v1541_v21 = vmul.f32 -1.442695, %v1097_v14 }
 0xfb8   :  { %v1635_v55 = vpop.eup %1634  ;;  %1636 = vpow2.f32 %v1541_v21 }
 0xfb9   :  { %v1106_v23 = vadd.f32 1.0, %v1635_v55 }
 0xfbb   :  { %1638 = vrcp.f32 %v1106_v23  ;;  %v1133_v30 = vand.u32 2147483648, %v1106_v23  ;;  %v1131_v50 = vand.u32 2147483647, %v1106_v23  ;;  %vm1127_vm4 = vweird.f32 %v1106_v23 }
 0xfbd   :  { %v1134_v56 = vor.u32 1.1754944e-38, %v1133_v30  ;;  %vm1132_vm8 = vcmp.eq.f32.partialorder %v1131_v50, 8.507059e+37 }
 0xfbe   :  { %v1637_v24 = vpop.eup %1636 }
 0xfbf   :  { %v1105_v25 = vadd.f32 1.0, %v1637_v24 }
 0xfc1   :  { %v1639_v26 = vpop.eup %1638  ;;  %1640 = vrcp.f32 %v1105_v25  ;;  %v1118_v60 = vand.u32 2147483648, %v1105_v25  ;;  %v1116_v2 = vand.u32 2147483647, %v1105_v25  ;;  %vm1112_vm10 = vweird.f32 %v1105_v25 }
 0xfc2   :  { %v1123_v28 = vmul.f32 %v1639_v26, %v1106_v23  ;;  %vm1128_vm3 = vweird.f32 %v1639_v26 }
 0xfc3   :  { %vm1129_vm7 = vmor %vm1127_vm4, %vm1128_vm3  ;;  %v1119_v22 = vor.u32 1.1754944e-38, %v1118_v60  ;;  %vm1117_vm12 = vcmp.eq.f32.partialorder %v1116_v2, 8.507059e+37 }
 0xfc4   :  { %v1124_v1 = vsub.f32 1.0, %v1123_v28 }
 0xfc6   :  { %v1125_v49 = vmul.f32 %v1639_v26, %v1124_v1 }
 0xfc7   :  { %v1641_v53 = vpop.eup %1640 }
 0xfc8   :  { %v1108_v61 = vmul.f32 %v1641_v53, %v1105_v25  ;;  %v1126_v54 = vadd.f32 %v1639_v26, %v1125_v49  ;;  %vm1113_vm9 = vweird.f32 %v1641_v53 }
 0xfc9   :  { %vm1114_vm11 = vmor %vm1112_vm10, %vm1113_vm9  ;;  %vm1477_vm10 = vcmask 25600  }
 0xfca   :  { %v1109_v57 = vsub.f32 1.0, %v1108_v61  ;;  %v1130_v58 = vsel %vm1129_vm7, %v1639_v26, %v1126_v54 }
 0xfcb   :  { %v1135_v59 = vsel %vm1132_vm8, %v1134_v56, %v1130_v58 }
 0xfcc   :  { %v1159_v63 = vmul.f32 2.0, %v1135_v59  ;;  %v1110_v0 = vmul.f32 %v1641_v53, %v1109_v57  ;;  %v1164_v17 = vmul.f32 %v1162_v9, %v1135_v59 }
 0xfce   :  { %v1544_v43 = vadd.f32 -1.0, %v1159_v63  ;;  %v1111_v29 = vadd.f32 %v1641_v53, %v1110_v0 }
 0xfd0   :  { %1166 = vrot.lane.b32.xlu1 %v1544_v43, %s1757_s0  ;;  %v1115_v46 = vsel %vm1114_vm11, %v1641_v53, %v1111_v29 }
 0xfd1   :  { %v1120_v4 = vsel %vm1117_vm12, %v1119_v22, %v1115_v46 }
 0xfd2   :  { %v1137_v5 = vmul.f32 2.0, %v1120_v4  ;;  %v1142_v62 = vmul.f32 %v1140_v13, %v1120_v4 }
 0xfd4   :  { %v1543_v27 = vadd.f32 -1.0, %v1137_v5 }
 0xfd6   :  { %1144 = vrot.lane.b32.xlu0 %v1543_v27, %s1757_s0 }
0x1042   :  { %v1167_v7 = vpop.permute.xlu1 %1166 }
0x1043   :  { %v1169_v52 = vmul.f32 %v1167_v7, %v1135_v59 }
0x1045   :  { %1171 = vrot.lane.b32.xlu0 %v1169_v52, %s1758_s7 }
0x1048   :  { %v1145_v10 = vpop.permute.xlu0 %1144 }
0x1049   :  { %v1147_v12 = vmul.f32 %v1145_v10, %v1120_v4 }
0x104b   :  { %1149 = vrot.lane.b32.xlu2 %v1147_v12, %s1758_s7 }
0x10a5   :  { %v1150_v15 = vpop.permute.xlu2 %1149 }
0x10a6   :  { %v2136_v16 = vadd.f32 %v1150_v15, %v1142_v62 }
0x10a8   :  { %1642 = vtanh.f32 %v2136_v16  ;;  %v1311_v13 = vrot.slane %v2136_v16, 6 }
0x10ae   :  { %v1643_v6 = vpop.eup %1642 }
0x10af   :  { %1155 = vrot.lane.b32.xlu1 %v1643_v6, %s1757_s0 }
0x10b7   :  { %v1172_v37 = vpop.permute.xlu0 %1171 }
0x10b8   :  { %v2141_v3 = vadd.f32 %v1172_v37, %v1164_v17 }
0x10ba   :  { %1644 = vtanh.f32 %v2141_v3  ;;  %v1333_v17 = vrot.slane %v2141_v3, 6 }
0x10c0   :  { %v1645_v31 = vpop.eup %1644 }
0x10c1   :  { %1177 = vrot.lane.b32.xlu2 %v1645_v31, %s1757_s0 }
0x111b   :  { %v1178_v48 = vpop.permute.xlu2 %1177 }
0x111c   :  { %v1180_v32 = vmul.f32 %v1178_v48, %v1135_v59 }
0x111e   :  { %1211 = vrot.lane.b32.xlu2 %v1180_v32, %s1757_s0 }
0x1121   :  { %v1156_v33 = vpop.permute.xlu1 %1155 }
0x1122   :  { %v1158_v34 = vmul.f32 %v1156_v33, %v1120_v4 }
0x1124   :  { %v1182_v35 = vrot.slane %v1158_v34, 4  ;;  %1207 = vrot.lane.b32.xlu1 %v1158_v34, %s1758_s7 }
0x1126   :  { %1183 = vrot.lane.b32.xlu0 %v1182_v35, %s1758_s7 }
0x1178   :  { %v1212_v8 = vpop.permute.xlu2 %1211 }
0x1196   :  { %v1208_v36 = vpop.permute.xlu1 %1207 }
0x1197   :  { %v1214_v39 = vsel %vm180_vm5, %v1208_v36, %v1212_v8 }
0x1198   :  { %v1219_v18 = vrot.slane %v1214_v39, 4  ;;  %v1184_v40 = vpop.permute.xlu0 %1183 }
0x1199   :  { %1545 = vmatmul.msk.f32.vlgmr.msrb.gmra.mxu2 %vm180_vm5, %v1184_v40 }
0x119a   :  { %1546 = vmatmul.msk.f32.vlgmr.msrb.gmra.mxu0 %vm208_vm6, %v1219_v18 }
0x11a1   :  { %1547 = vmatmul.msk.f32.vlgmr.msra.gmra.mxu2 %vm208_vm6, %v1219_v18 }
0x1217   :  { %v1239_v42 = vpop.f32.mrf.mxu0 }
0x1218   :  { %v1264_v19 = vrot.slane %v1239_v42, 2 }
0x121a   :  { %v1268_v45 = vadd.f32 %v1264_v19, %v2068_v11 }
0x121c   :  { %v1548_v47 = vmul.f32 -1.442695, %v1268_v45  ;;  %v1204_v51 = vpop.f32.mrf.mxu2 }
0x121d   :  { %v1205_v41 = vadd.f32 %v2127_v38, %v1204_v51 }
0x121e   :  { %1646 = vpow2.f32 %v1548_v47 }
0x121f   :  { %v1216_v21 = vrot.slane %v1205_v41, 2 }
0x1224   :  { %v1647_v44 = vpop.eup %1646  ;;  %v1259_v20 = vpop.f32.mrf.mxu2 }
0x1225   :  { %v1276_v14 = vadd.f32 1.0, %v1647_v44  ;;  %v1265_v55 = vrot.slane %v1259_v20, 2 }
0x1227   :  { %1648 = vrcp.f32 %v1276_v14  ;;  %v1269_v23 = vadd.f32 %v1265_v55, %v1216_v21  ;;  %v1289_v30 = vand.u32 2147483648, %v1276_v14  ;;  %v1287_v50 = vand.u32 2147483647, %v1276_v14 }
0x1228   :  { %vm1283_vm13 = vweird.f32 %v1276_v14 }
0x1229   :  { %v1549_v24 = vmul.f32 -1.442695, %v1269_v23  ;;  %v1290_v61 = vor.u32 1.1754944e-38, %v1289_v30  ;;  %vm1288_vm15 = vcmp.eq.f32.partialorder %v1287_v50, 8.507059e+37 }
0x122b   :  { %1650 = vpow2.f32 %v1549_v24 }
0x122d   :  { %v1649_v25 = vpop.eup %1648 }
0x122e   :  { %v1279_v26 = vmul.f32 %v1649_v25, %v1276_v14  ;;  %vm1284_vm6 = vweird.f32 %v1649_v25 }
0x122f   :  { %vm1285_vm14 = vmor %vm1283_vm13, %vm1284_vm6 }
0x1230   :  { %v1280_v28 = vsub.f32 1.0, %v1279_v26 }
0x1231   :  { %v1651_v1 = vpop.eup %1650 }
0x1232   :  { %v1277_v11 = vadd.f32 1.0, %v1651_v1  ;;  %v1281_v49 = vmul.f32 %v1649_v25, %v1280_v28 }
0x1234   :  { %1652 = vrcp.f32 %v1277_v11  ;;  %v1282_v53 = vadd.f32 %v1649_v25, %v1281_v49  ;;  %v1304_v0 = vand.u32 2147483648, %v1277_v11  ;;  %v1302_v43 = vand.u32 2147483647, %v1277_v11 }
0x1235   :  { %vm1298_vm1 = vweird.f32 %v1277_v11 }
0x1236   :  { %v1286_v54 = vsel %vm1285_vm14, %v1649_v25, %v1282_v53  ;;  %v1305_v22 = vor.u32 1.1754944e-38, %v1304_v0  ;;  %vm1303_vm3 = vcmp.eq.f32.partialorder %v1302_v43, 8.507059e+37  ;;  %v1567_v0 = vld [vmem:[#allocation2 + $0x68] ss:$0 sm:$0xff] }
0x1237   :  { %v1291_v56 = vsel %vm1288_vm15, %v1290_v61, %v1286_v54  ;;  %v1449_v54 = vld [vmem:[#allocation2 + $0x60] sm:$0xff] }
0x1238   :  { %v1308_v57 = vmul.f32 2.0, %v1291_v56  ;;  %v1313_v62 = vmul.f32 %v1311_v13, %v1291_v56  ;;  %1469 = vmatpush.msra.mxu3 %v1449_v54 }
0x123a   :  { %v1653_v58 = vpop.eup %1652  ;;  %v1550_v59 = vadd.f32 -1.0, %v1308_v57  ;;  %v1447_v57 = vld [vmem:[#allocation2 + $0x50] sm:$0xff] }
0x123b   :  { %v1294_v60 = vmul.f32 %v1653_v58, %v1277_v11  ;;  %vm1299_vm0 = vweird.f32 %v1653_v58 }
0x123c   :  { %1315 = vrot.lane.b32.xlu0 %v1550_v59, %s1757_s0  ;;  %vm1300_vm2 = vmor %vm1298_vm1, %vm1299_vm0 }
0x123d   :  { %v1295_v63 = vsub.f32 1.0, %v1294_v60 }
0x123f   :  { %v1296_v2 = vmul.f32 %v1653_v58, %v1295_v63 }
0x1241   :  { %v1297_v29 = vadd.f32 %v1653_v58, %v1296_v2 }
0x1243   :  { %v1301_v46 = vsel %vm1300_vm2, %v1653_v58, %v1297_v29  ;;  %v1446_v58 = vld [vmem:[#allocation2 + $0x48] sm:$0xff] }
0x1244   :  { %v1306_v4 = vsel %vm1303_vm3, %v1305_v22, %v1301_v46 }
0x1245   :  { %v1330_v5 = vmul.f32 2.0, %v1306_v4  ;;  %v1335_v37 = vmul.f32 %v1333_v17, %v1306_v4 }
0x1247   :  { %v1551_v27 = vadd.f32 -1.0, %v1330_v5 }
0x1249   :  { %1337 = vrot.lane.b32.xlu1 %v1551_v27, %s1757_s0 }
0x12ae   :  { %v1316_v7 = vpop.permute.xlu0 %1315 }
0x12af   :  { %v1318_v52 = vmul.f32 %v1316_v7, %v1291_v56 }
0x12b1   :  { %1320 = vrot.lane.b32.xlu2 %v1318_v52, %s1758_s7 }
0x12bb   :  { %v1338_v10 = vpop.permute.xlu1 %1337 }
0x12bc   :  { %v1340_v12 = vmul.f32 %v1338_v10, %v1306_v4 }
0x12be   :  { %1342 = vrot.lane.b32.xlu0 %v1340_v12, %s1758_s7 }
0x130b   :  { %v1321_v15 = vpop.permute.xlu2 %1320 }
0x130c   :  { %v1323_v6 = vadd.f32 %v1321_v15, %v1313_v62 }
0x130e   :  { %1654 = vtanh.f32 %v1323_v6 }
0x1314   :  { %v1655_v9 = vpop.eup %1654 }
0x1315   :  { %1326 = vrot.lane.b32.xlu1 %v1655_v9, %s1757_s0 }
0x1330   :  { %v1343_v31 = vpop.permute.xlu0 %1342 }
0x1331   :  { %v1345_v48 = vadd.f32 %v1343_v31, %v1335_v37 }
0x1333   :  { %1656 = vtanh.f32 %v1345_v48  ;;  %v1427_v11 = vrot.slane %v1345_v48, 6 }
0x1339   :  { %v1657_v32 = vpop.eup %1656 }
0x133a   :  { %1348 = vrot.lane.b32.xlu2 %v1657_v32, %s1757_s0 }
0x1387   :  { %v1327_v33 = vpop.permute.xlu1 %1326 }
0x1388   :  { %v1329_v34 = vmul.f32 %v1327_v33, %v1291_v56  ;;  %v1448_v56 = vld [vmem:[#allocation2 + $0x58] sm:$0xff] }
0x1389   :  { %1470 = vmatpush.msra.mxu3 %v1448_v56 }
0x138a   :  { %v1353_v35 = vrot.slane %v1329_v34, 6 }
0x138b   :  { %1471 = vmatpush.msra.mxu3 %v1447_v57 }
0x138c   :  { %1354 = vrot.lane.b32.xlu0 %v1353_v35, %s1758_s7 }
0x138d   :  { %1472 = vmatpush.msra.mxu3 %v1446_v58 }
0x1394   :  { %v1349_v16 = vpop.permute.xlu2 %1348 }
0x1395   :  { %v1351_v8 = vmul.f32 %v1349_v16, %v1306_v4 }
0x1397   :  { %v1379_v36 = vrot.slane %v1351_v8, 6 }
0x1399   :  { %1380 = vrot.lane.b32.xlu1 %v1379_v36, %s1758_s7 }
0x13fe   :  { %v1355_v39 = vpop.permute.xlu0 %1354 }
0x13ff   :  { %1552 = vmatmul.msk.f32.vlgmr.msrb.gmra.mxu3 %vm180_vm5, %v1355_v39 }
0x140b   :  { %v1381_v3 = vpop.permute.xlu1 %1380 }
0x140c   :  { %1553 = vmatmul.msk.f32.vlgmr.msrb.gmra.mxu1 %vm180_vm5, %v1381_v3 }
0x1482   :  { %v1375_v18 = vpop.f32.mrf.mxu3 }
0x1483   :  { %v1376_v40 = vadd.f32 %v2127_v38, %v1375_v18 }
0x1489   :  { %v1401_v42 = vpop.f32.mrf.mxu1 }
0x148a   :  { %v1404_v19 = vadd.f32 %v1401_v42, %v1376_v40 }
0x148c   :  { %v1554_v45 = vmul.f32 -1.442695, %v1404_v19 }
0x148e   :  { %1658 = vpow2.f32 %v1554_v45 }
0x1494   :  { %v1659_v47 = vpop.eup %1658 }
0x1495   :  { %v1408_v51 = vadd.f32 1.0, %v1659_v47 }
0x1497   :  { %1660 = vrcp.f32 %v1408_v51  ;;  %v1420_v14 = vand.u32 2147483648, %v1408_v51  ;;  %v1418_v55 = vand.u32 2147483647, %v1408_v51  ;;  %vm1414_vm7 = vweird.f32 %v1408_v51 }
0x1499   :  { %v1421_v24 = vor.u32 1.1754944e-38, %v1420_v14  ;;  %vm1419_vm9 = vcmp.eq.f32.partialorder %v1418_v55, 8.507059e+37 }
0x149d   :  { %v1661_v41 = vpop.eup %1660 }
0x149e   :  { %v1410_v44 = vmul.f32 %v1661_v41, %v1408_v51  ;;  %vm1415_vm4 = vweird.f32 %v1661_v41 }
0x149f   :  { %vm1416_vm8 = vmor %vm1414_vm7, %vm1415_vm4 }
0x14a0   :  { %v1411_v20 = vsub.f32 1.0, %v1410_v44 }
0x14a2   :  { %v1412_v21 = vmul.f32 %v1661_v41, %v1411_v20 }
0x14a4   :  { %v1413_v23 = vadd.f32 %v1661_v41, %v1412_v21 }
0x14a6   :  { %v1417_v25 = vsel %vm1416_vm8, %v1661_v41, %v1413_v23 }
0x14a7   :  { %v1422_v38 = vsel %vm1419_vm9, %v1421_v24, %v1417_v25 }
0x14a8   :  { %v1424_v26 = vmul.f32 2.0, %v1422_v38  ;;  %v1429_v49 = vmul.f32 %v1427_v11, %v1422_v38 }
0x14aa   :  { %v1555_v28 = vadd.f32 -1.0, %v1424_v26 }
0x14ac   :  { %1431 = vrot.lane.b32.xlu2 %v1555_v28, %s1757_s0 }
0x1506   :  { %v1432_v1 = vpop.permute.xlu2 %1431 }
0x1507   :  { %v1434_v30 = vmul.f32 %v1432_v1, %v1422_v38 }
0x1509   :  { %1436 = vrot.lane.b32.xlu0 %v1434_v30, %s1758_s7 }
0x157b   :  { %v1437_v50 = vpop.permute.xlu0 %1436 }
0x157c   :  { %v1439_v53 = vadd.f32 %v1437_v50, %v1429_v49 }
0x157e   :  { %1662 = vtanh.f32 %v1439_v53 }
0x1584   :  { %v1663_v61 = vpop.eup %1662 }
0x1585   :  { %1442 = vrot.lane.b32.xlu1 %v1663_v61, %s1757_s0 }
0x15f7   :  { %v1443_v59 = vpop.permute.xlu1 %1442 }
0x15f8   :  { %v1445_v60 = vmul.f32 %v1443_v59, %v1422_v38 }
0x15fa   :  { %1453 = vrot.lane.b32.xlu2 %v1445_v60, %s1758_s7 }
0x1654   :  { %v1454_v63 = vpop.permute.xlu2 %1453 }
0x1655   :  { %1556 = vmatmul.msk.f32.vlgmr.msra.gmra.mxu3 %vm180_vm5, %v1454_v63 }
0x16d8   :  { %v1474_v2 = vpop.f32.mrf.mxu3 }
0x16d9   :  { %v1475_v43 = vadd.f32 %v1567_v0, %v1474_v2 }
0x16db   :  { %1478 = vst.msk [vmem:[#allocation7] sm:$0x3] %vm1477_vm10, %v1475_v43 }
0x16dc   :  { %1489 = dma.vmem_to_hbm [thread:$0]  %s1485_s10, 32, %s1487_s13, [#allocation4]  }
0x16dd   :  { %1749 = dma.done.wait [#allocation4], 32  }
0x16de   :  { %1750 = vsyncadd [#allocation4], 4294967264 }
0x16df   :  { %1494 = vsyncpa [#allocation3], 1 }
0x16e0   :  { %1495 = vsyncpa [#allocation6], 1 }
0x16e1   :  { %1496 = vsyncpa [#allocation4], 1 }

</bundles_post_ra>
